<compile_context>
chip_gen: v6e
topology: v6e:2x2x1
jax: 0.10.0
libtpu: 0.0.40
codegen_flags: <defaults>
</compile_context>

<pallas_src>
import functools

import jax
import jax.numpy as jnp
from jax.experimental import pallas as pl
from jax.experimental.pallas import tpu as pltpu


# ------------------------------- tiling helpers ------------------------------

_VMEM_BLOCK_BUDGET = 10 * 1024 * 1024   # per-block working-set target (bytes)
_VMEM_LIMIT = 32 * 1024 * 1024          # scoped-VMEM limit: safe on v5e/v6e/v7x


def _largest_divisor_leq(n, cap):
    cap = max(1, min(n, int(cap)))
    for d in range(cap, 0, -1):
        if n % d == 0:
            return d
    return 1


def _pick_row_group(H, W):
    """Image rows per matmul row, G (divides H): target ~256-lane contraction."""
    best, best_score = 1, None
    for g in range(1, H + 1):
        if H % g:
            continue
        gw = g * W
        if gw > 512 and g > 1:           # keep the (G*W, 4*G*W) one-hot small
            continue
        score = abs(gw - 256)
        if best_score is None or score < best_score:
            best, best_score = g, score
    return best


def _upsample_onehot(W, G, dtype):
    """Block-diagonal one-hot (G*W, 4*G*W) for 2x nearest upsample.

    out[:, i*4W + k*2W + 2j + dj] = in[:, i*W + j]   (k, dj in {0,1})
    so per image row the output holds [2x-wide row, same row again] and the
    (.., 4*G*W) result reshapes for free to (.., 2H, 2W). 0/1 entries are
    exact in bf16, so the matmul is a bit-exact copy in any dtype.
    """
    GW = G * W
    col = jnp.arange(4 * GW, dtype=jnp.int32)
    src = (col // (4 * W)) * W + (col % (2 * W)) // 2
    row = jnp.arange(GW, dtype=jnp.int32)
    return (row[:, None] == src[None, :]).astype(dtype)


# --------------------------------- kernels -----------------------------------

def _classifier_body(feat_ref, w_ref, b_ref, logit_ref, prob_ref, ent_ref):
    """nn.Linear(256, 3) + Softmax(dim=1) + Entropy, entirely on-chip."""
    f = feat_ref[...].astype(jnp.float32)
    w = w_ref[...].astype(jnp.float32)
    logits = jnp.dot(f, w, preferred_element_type=jnp.float32)
    logits = logits + b_ref[...].astype(jnp.float32)
    logit_ref[...] = logits.astype(logit_ref.dtype)
    m = jnp.max(logits, axis=1, keepdims=True)
    e = jnp.exp(logits - m)                                  # EUP
    s = jnp.sum(e, axis=1, keepdims=True)
    p = e * pl.reciprocal(s, approx=False)
    prob_ref[...] = p.astype(prob_ref.dtype)
    # -sum p*log(p) == log(s) - sum p*(logits - m): one log instead of three.
    # (torch adds +1e-7 inside its log; the deviation here is <= ~3e-7.)
    ent = jnp.log(s) - jnp.sum(p * (logits - m), axis=1, keepdims=True)
    ent_ref[...] = ent.astype(ent_ref.dtype)


def _channel_mean(x, C, Hg):
    """x: (bn, C*Hg, lanes); tiny channel sum accumulated in f32 (VPU adds)."""
    acc = x[:, 0:Hg, :].astype(jnp.float32)
    for c in range(1, C):
        acc = acc + x[:, c * Hg:(c + 1) * Hg, :].astype(jnp.float32)
    return acc * (1.0 / C)


def _gray_up_cls_kernel(xa_ref, xb_ref, rw_ref, feat_ref, w_ref, b_ref,
                        ga_ref, ua_ref, gb_ref, ub_ref,
                        logit_ref, prob_ref, ent_ref, *, C, Hg):
    rw = rw_ref[...]                                         # (GW, 4GW) constant
    for x_ref, g_ref, u_ref in ((xa_ref, ga_ref, ua_ref),
                                (xb_ref, gb_ref, ub_ref)):
        x = x_ref[...]                   # (bn, C*Hg, G*W): single read of the image
        g_ref[...] = _channel_mean(x, C, Hg).astype(g_ref.dtype)
        for n in range(x_ref.shape[0]):  # per-sample clean 2-D MXU matmul
            u_ref[n] = jnp.dot(x[n], rw,
                               preferred_element_type=jnp.float32
                               ).astype(u_ref.dtype)
    # Recomputed idempotently every grid step: correct no matter how the
    # "parallel" axis is split across TensorCores; inputs are fetched once
    # (constant block index) so there is no extra HBM traffic.
    _classifier_body(feat_ref, w_ref, b_ref, logit_ref, prob_ref, ent_ref)


def _gray_cls_kernel(xa_ref, xb_ref, feat_ref, w_ref, b_ref,
                     ga_ref, gb_ref, logit_ref, prob_ref, ent_ref, *, C):
    for x_ref, g_ref in ((xa_ref, ga_ref), (xb_ref, gb_ref)):
        x = x_ref[...]                                       # (bn, C, H*W)
        g_ref[...] = _channel_mean(x, C, 1).astype(g_ref.dtype)
    _classifier_body(feat_ref, w_ref, b_ref, logit_ref, prob_ref, ent_ref)


# --------------------------- forward-path wrapper -----------------------------

def dgnetpp_forward_parts(x_a, x_b, feat, fc_w_t, fc_b_row):
    """Fused DGNetpp_Trainer forward pieces.

    Returns (gray_a, gray_b, up_a, up_b, logits, probs, entropy):
      gray_* = to_gray(False)(x_*), up_* = scale2(x_*),
      logits = fc(feat), probs = Softmax(dim=1)(logits), entropy = Entropy(probs).
    """
    N, C, H, W = x_a.shape
    assert x_b.shape == x_a.shape
    B, Fdim = feat.shape
    ncls = fc_w_t.shape[1]
    dt = x_a.dtype
    item = dt.itemsize

    cls_shapes = (jax.ShapeDtypeStruct((B, ncls), jnp.float32),
                  jax.ShapeDtypeStruct((B, ncls), jnp.float32),
                  jax.ShapeDtypeStruct((B, 1), jnp.float32))
    cls_in_specs = [pl.BlockSpec((B, Fdim), lambda i: (0, 0)),
                    pl.BlockSpec((Fdim, ncls), lambda i: (0, 0)),
                    pl.BlockSpec((1, ncls), lambda i: (0, 0))]
    cls_out_specs = (pl.BlockSpec((B, ncls), lambda i: (0, 0)),
                     pl.BlockSpec((B, ncls), lambda i: (0, 0)),
                     pl.BlockSpec((B, 1), lambda i: (0, 0)))
    cparams = pltpu.CompilerParams(dimension_semantics=("parallel",),
                                   vmem_limit_bytes=_VMEM_LIMIT)

    if H > 128:
        # torch's scale2 is the identity for x.size(2) > 128: no upsample work,
        # x_a / x_b are returned unchanged (zero-copy); gray + classifier fused.
        HW = H * W
        xa3 = x_a.reshape(N, C, HW)
        xb3 = x_b.reshape(N, C, HW)
        per_sample = (C * HW + HW) * item * 2 * 2     # 2 images x 2 DMA buffers
        bn = _largest_divisor_leq(
            N, min(_VMEM_BLOCK_BUDGET // per_sample, 8, max(1, N // 4)))
        kernel = functools.partial(_gray_cls_kernel, C=C)
        gray_a, gray_b, logits, probs, ent = pl.pallas_call(
            kernel,
            out_shape=(jax.ShapeDtypeStruct((N, 1, HW), dt),
                       jax.ShapeDtypeStruct((N, 1, HW), dt)) + cls_shapes,
            grid=(N // bn,),
            in_specs=[pl.BlockSpec((bn, C, HW), lambda i: (i, 0, 0)),
                      pl.BlockSpec((bn, C, HW), lambda i: (i, 0, 0))]
                     + cls_in_specs,
            out_specs=(pl.BlockSpec((bn, 1, HW), lambda i: (i, 0, 0)),
                       pl.BlockSpec((bn, 1, HW), lambda i: (i, 0, 0)))
                      + cls_out_specs,
            compiler_params=cparams,
        )(xa3, xb3, feat, fc_w_t, fc_b_row)
        return (gray_a.reshape(N, 1, H, W), gray_b.reshape(N, 1, H, W),
                x_a, x_b, logits, probs, ent[:, 0])

    # ---- H <= 128: fused to_gray + 2x nearest upsample + classifier ----
    G = _pick_row_group(H, W)        # image rows grouped per matmul row, G | H
    Hg = H // G
    GW = G * W
    # Free (contiguous) views: grouped rows are lane-dense (~256 lanes).
    xa3 = x_a.reshape(N, C * Hg, GW)
    xb3 = x_b.reshape(N, C * Hg, GW)
    rw = _upsample_onehot(W, G, dt)  # (GW, 4GW) block-diagonal constant

    per_sample = (C * H * W + H * W + 4 * C * H * W) * item * 2 * 2
    const_bytes = 4 * GW * GW * item + (B * Fdim + Fdim * ncls) * 4
    bn_cap = max(1, (_VMEM_BLOCK_BUDGET - const_bytes) // per_sample)
    bn = _largest_divisor_leq(N, min(bn_cap, 8, max(1, N // 4)))

    kernel = functools.partial(_gray_up_cls_kernel, C=C, Hg=Hg)
    gray_a, up_a, gray_b, up_b, logits, probs, ent = pl.pallas_call(
        kernel,
        out_shape=(jax.ShapeDtypeStruct((N, Hg, GW), dt),
                   jax.ShapeDtypeStruct((N, C * Hg, 4 * GW), dt),
                   jax.ShapeDtypeStruct((N, Hg, GW), dt),
                   jax.ShapeDtypeStruct((N, C * Hg, 4 * GW), dt)) + cls_shapes,
        grid=(N // bn,),
        in_specs=[pl.BlockSpec((bn, C * Hg, GW), lambda i: (i, 0, 0)),
                  pl.BlockSpec((bn, C * Hg, GW), lambda i: (i, 0, 0)),
                  pl.BlockSpec((GW, 4 * GW), lambda i: (0, 0))]
                 + cls_in_specs,
        out_specs=(pl.BlockSpec((bn, Hg, GW), lambda i: (i, 0, 0)),
                   pl.BlockSpec((bn, C * Hg, 4 * GW), lambda i: (i, 0, 0)),
                   pl.BlockSpec((bn, Hg, GW), lambda i: (i, 0, 0)),
                   pl.BlockSpec((bn, C * Hg, 4 * GW), lambda i: (i, 0, 0)))
                  + cls_out_specs,
        compiler_params=cparams,
    )(xa3, xb3, rw, feat, fc_w_t, fc_b_row)

    # Free dim splits/merges (contiguous) back to NCHW layouts.
    return (gray_a.reshape(N, 1, H, W), gray_b.reshape(N, 1, H, W),
            up_a.reshape(N, C, 2 * H, 2 * W), up_b.reshape(N, C, 2 * H, 2 * W),
            logits, probs, ent[:, 0])


def make_fc_params(key, in_dim=256, out_dim=3):
    # torch.nn.init.kaiming_uniform_ (a=0, fan_in): bound = sqrt(6/fan_in); b=0.
    bound = (6.0 / in_dim) ** 0.5
    w = jax.random.uniform(key, (out_dim, in_dim), jnp.float32, -bound, bound)
    b = jnp.zeros((out_dim,), jnp.float32)
    return w, b


if __name__ == "__main__":
    key = jax.random.PRNGKey(0)
    k1, k2, k3, k4 = jax.random.split(key, 4)

    B, C, H, W = 2, 3, 16, 16
    x_a = jax.random.normal(k1, (B, C, H, W), jnp.float32)
    x_b = jax.random.normal(k2, (B, C, H, W), jnp.float32)
    feat = jax.random.normal(k3, (B, 256), jnp.float32)
    fc_w, fc_b = make_fc_params(k4)

    # Kernel-layout classifier params (pre-transposed once).
    fc_w_t = fc_w.T                  # (256, 3)
    fc_b_row = fc_b.reshape(1, -1)   # (1, 3)

    fwd = jax.jit(dgnetpp_forward_parts)
    outs = jax.block_until_ready(fwd(x_a, x_b, feat, fc_w_t, fc_b_row))
    gray_a, gray_b, up_a, up_b, logits, probs, ent = outs

    # Shape checks.
    assert gray_a.shape == (B, 1, H, W) and gray_b.shape == (B, 1, H, W)
    assert up_a.shape == (B, C, 2 * H, 2 * W) and up_b.shape == (B, C, 2 * H, 2 * W)
    assert logits.shape == (B, 3) and probs.shape == (B, 3) and ent.shape == (B,)

    # Plain-JAX references.
    ref_gray_a = jnp.mean(x_a, axis=1, keepdims=True)
    ref_gray_b = jnp.mean(x_b, axis=1, keepdims=True)
    ref_up_a = jnp.repeat(jnp.repeat(x_a, 2, axis=2), 2, axis=3)
    ref_up_b = jnp.repeat(jnp.repeat(x_b, 2, axis=2), 2, axis=3)
    ref_logits = feat @ fc_w.T + fc_b
    ref_probs = jax.nn.softmax(ref_logits, axis=1)
    ref_ent = jnp.sum(-ref_probs * jnp.log(ref_probs + 1e-7), axis=1)

    assert jnp.allclose(gray_a, ref_gray_a, atol=1e-5)
    assert jnp.allclose(gray_b, ref_gray_b, atol=1e-5)
    assert jnp.allclose(up_a, ref_up_a, atol=1e-5)
    assert jnp.allclose(up_b, ref_up_b, atol=1e-5)
    assert jnp.allclose(logits, ref_logits, atol=1e-4)
    assert jnp.allclose(probs, ref_probs, atol=1e-4)
    assert jnp.allclose(ent, ref_ent, atol=1e-4)

    print("KERNEL_OK")
</pallas_src>

<mosaic_0001>
module attributes {stable_mosaic.version = 11 : i64} {
  func.func @_gray_up_cls_kernel(%arg0: i32, %arg1: memref<1x3x256xf32, #tpu.memory_space<vmem>>, %arg2: memref<1x3x256xf32, #tpu.memory_space<vmem>>, %arg3: memref<256x1024xf32, #tpu.memory_space<vmem>>, %arg4: memref<2x256xf32, #tpu.memory_space<vmem>>, %arg5: memref<256x3xf32, #tpu.memory_space<vmem>>, %arg6: memref<1x3xf32, #tpu.memory_space<vmem>>, %arg7: memref<1x1x256xf32, #tpu.memory_space<vmem>>, %arg8: memref<1x3x1024xf32, #tpu.memory_space<vmem>>, %arg9: memref<1x1x256xf32, #tpu.memory_space<vmem>>, %arg10: memref<1x3x1024xf32, #tpu.memory_space<vmem>>, %arg11: memref<2x3xf32, #tpu.memory_space<vmem>>, %arg12: memref<2x3xf32, #tpu.memory_space<vmem>>, %arg13: memref<2x1xf32, #tpu.memory_space<vmem>>) attributes {dimension_semantics = [#tpu.dimension_semantics<parallel>], iteration_bounds = array<i64: 2>, scalar_prefetch = 0 : i64, scratch_operands = 0 : i64, tpu.core_type = #tpu.core_type<tc>, window_params = [{transform_indices = @transform_0, window_bounds = array<i64: 1, 3, 256>}, {transform_indices = @transform_1, window_bounds = array<i64: 1, 3, 256>}, {pipeline_mode = #tpu.pipeline_mode<synchronous>, transform_indices = @transform_2, window_bounds = array<i64: 256, 1024>}, {pipeline_mode = #tpu.pipeline_mode<synchronous>, transform_indices = @transform_3, window_bounds = array<i64: 2, 256>}, {pipeline_mode = #tpu.pipeline_mode<synchronous>, transform_indices = @transform_4, window_bounds = array<i64: 256, 3>}, {pipeline_mode = #tpu.pipeline_mode<synchronous>, transform_indices = @transform_5, window_bounds = array<i64: 1, 3>}, {transform_indices = @transform_6, window_bounds = array<i64: 1, 1, 256>}, {transform_indices = @transform_7, window_bounds = array<i64: 1, 3, 1024>}, {transform_indices = @transform_8, window_bounds = array<i64: 1, 1, 256>}, {transform_indices = @transform_9, window_bounds = array<i64: 1, 3, 1024>}, {pipeline_mode = #tpu.pipeline_mode<synchronous>, transform_indices = @transform_10, window_bounds = array<i64: 2, 3>}, {pipeline_mode = #tpu.pipeline_mode<synchronous>, transform_indices = @transform_11, window_bounds = array<i64: 2, 3>}, {pipeline_mode = #tpu.pipeline_mode<synchronous>, transform_indices = @transform_12, window_bounds = array<i64: 2, 1>}]} {
    %c0 = arith.constant 0 : index
    %c0_0 = arith.constant 0 : index
    %0 = vector.load %arg3[%c0, %c0_0] : memref<256x1024xf32, #tpu.memory_space<vmem>>, vector<256x1024xf32>
    %c0_1 = arith.constant 0 : index
    %c0_2 = arith.constant 0 : index
    %c0_3 = arith.constant 0 : index
    %1 = vector.load %arg1[%c0_1, %c0_2, %c0_3] : memref<1x3x256xf32, #tpu.memory_space<vmem>>, vector<1x3x256xf32>
    %2 = vector.extract_strided_slice %1 {offsets = [0, 0, 0], sizes = [1, 1, 256], strides = [1, 1, 1]} : vector<1x3x256xf32> to vector<1x1x256xf32>
    %3 = vector.extract_strided_slice %1 {offsets = [0, 1, 0], sizes = [1, 1, 256], strides = [1, 1, 1]} : vector<1x3x256xf32> to vector<1x1x256xf32>
    %4 = arith.addf %2, %3 : vector<1x1x256xf32>
    %5 = vector.extract_strided_slice %1 {offsets = [0, 2, 0], sizes = [1, 1, 256], strides = [1, 1, 1]} : vector<1x3x256xf32> to vector<1x1x256xf32>
    %6 = arith.addf %4, %5 : vector<1x1x256xf32>
    %cst = arith.constant 0.333333343 : f32
    %7 = vector.broadcast %cst : f32 to vector<1x1x256xf32>
    %8 = arith.mulf %6, %7 : vector<1x1x256xf32>
    %c0_4 = arith.constant 0 : index
    %c0_5 = arith.constant 0 : index
    %c0_6 = arith.constant 0 : index
    %9 = vector.load %arg7[%c0_4, %c0_5, %c0_6] : memref<1x1x256xf32, #tpu.memory_space<vmem>>, vector<1x1x256xf32>
    tpu.vector_store %arg7[%c0_4, %c0_5, %c0_6], %8 {strides = array<i32>} : memref<1x1x256xf32, #tpu.memory_space<vmem>>, vector<1x1x256xf32>,
    %10 = vector.shape_cast %1 : vector<1x3x256xf32> to vector<3x256xf32>
    %cst_7 = arith.constant dense<0.000000e+00> : vector<3x1024xf32>
    %11 = tpu.matmul %10, %0, %cst_7 {dimension_numbers = #tpu.dot_dimension_numbers<[1], [0], [0], [1], [0, 0, 1, 1], [], []>} : vector<3x256xf32>, vector<256x1024xf32>, vector<3x1024xf32> -> vector<3x1024xf32>
    %c0_8 = arith.constant 0 : index
    %c0_9 = arith.constant 0 : index
    %c0_10 = arith.constant 0 : index
    %12 = vector.load %arg8[%c0_8, %c0_9, %c0_10] : memref<1x3x1024xf32, #tpu.memory_space<vmem>>, vector<1x3x1024xf32>
    %13 = vector.shape_cast %12 : vector<1x3x1024xf32> to vector<3x1024xf32>
    %14 = vector.shape_cast %11 : vector<3x1024xf32> to vector<1x3x1024xf32>
    tpu.vector_store %arg8[%c0_8, %c0_9, %c0_10], %14 {strides = array<i32>} : memref<1x3x1024xf32, #tpu.memory_space<vmem>>, vector<1x3x1024xf32>,
    %c0_11 = arith.constant 0 : index
    %c0_12 = arith.constant 0 : index
    %c0_13 = arith.constant 0 : index
    %15 = vector.load %arg2[%c0_11, %c0_12, %c0_13] : memref<1x3x256xf32, #tpu.memory_space<vmem>>, vector<1x3x256xf32>
    %16 = vector.extract_strided_slice %15 {offsets = [0, 0, 0], sizes = [1, 1, 256], strides = [1, 1, 1]} : vector<1x3x256xf32> to vector<1x1x256xf32>
    %17 = vector.extract_strided_slice %15 {offsets = [0, 1, 0], sizes = [1, 1, 256], strides = [1, 1, 1]} : vector<1x3x256xf32> to vector<1x1x256xf32>
    %18 = arith.addf %16, %17 : vector<1x1x256xf32>
    %19 = vector.extract_strided_slice %15 {offsets = [0, 2, 0], sizes = [1, 1, 256], strides = [1, 1, 1]} : vector<1x3x256xf32> to vector<1x1x256xf32>
    %20 = arith.addf %18, %19 : vector<1x1x256xf32>
    %cst_14 = arith.constant 0.333333343 : f32
    %21 = vector.broadcast %cst_14 : f32 to vector<1x1x256xf32>
    %22 = arith.mulf %20, %21 : vector<1x1x256xf32>
    %c0_15 = arith.constant 0 : index
    %c0_16 = arith.constant 0 : index
    %c0_17 = arith.constant 0 : index
    %23 = vector.load %arg9[%c0_15, %c0_16, %c0_17] : memref<1x1x256xf32, #tpu.memory_space<vmem>>, vector<1x1x256xf32>
    tpu.vector_store %arg9[%c0_15, %c0_16, %c0_17], %22 {strides = array<i32>} : memref<1x1x256xf32, #tpu.memory_space<vmem>>, vector<1x1x256xf32>,
    %24 = vector.shape_cast %15 : vector<1x3x256xf32> to vector<3x256xf32>
    %cst_18 = arith.constant dense<0.000000e+00> : vector<3x1024xf32>
    %25 = tpu.matmul %24, %0, %cst_18 {dimension_numbers = #tpu.dot_dimension_numbers<[1], [0], [0], [1], [0, 0, 1, 1], [], []>} : vector<3x256xf32>, vector<256x1024xf32>, vector<3x1024xf32> -> vector<3x1024xf32>
    %c0_19 = arith.constant 0 : index
    %c0_20 = arith.constant 0 : index
    %c0_21 = arith.constant 0 : index
    %26 = vector.load %arg10[%c0_19, %c0_20, %c0_21] : memref<1x3x1024xf32, #tpu.memory_space<vmem>>, vector<1x3x1024xf32>
    %27 = vector.shape_cast %26 : vector<1x3x1024xf32> to vector<3x1024xf32>
    %28 = vector.shape_cast %25 : vector<3x1024xf32> to vector<1x3x1024xf32>
    tpu.vector_store %arg10[%c0_19, %c0_20, %c0_21], %28 {strides = array<i32>} : memref<1x3x1024xf32, #tpu.memory_space<vmem>>, vector<1x3x1024xf32>,
    %c0_22 = arith.constant 0 : index
    %c0_23 = arith.constant 0 : index
    %29 = vector.load %arg4[%c0_22, %c0_23] : memref<2x256xf32, #tpu.memory_space<vmem>>, vector<2x256xf32>
    %c0_24 = arith.constant 0 : index
    %c0_25 = arith.constant 0 : index
    %30 = vector.load %arg5[%c0_24, %c0_25] : memref<256x3xf32, #tpu.memory_space<vmem>>, vector<256x3xf32>
    %cst_26 = arith.constant dense<0.000000e+00> : vector<2x3xf32>
    %31 = tpu.matmul %29, %30, %cst_26 {dimension_numbers = #tpu.dot_dimension_numbers<[1], [0], [0], [1], [0, 0, 1, 1], [], []>} : vector<2x256xf32>, vector<256x3xf32>, vector<2x3xf32> -> vector<2x3xf32>
    %c0_27 = arith.constant 0 : index
    %c0_28 = arith.constant 0 : index
    %32 = vector.load %arg6[%c0_27, %c0_28] : memref<1x3xf32, #tpu.memory_space<vmem>>, vector<1x3xf32>
    %33 = vector.broadcast %32 : vector<1x3xf32> to vector<2x3xf32>
    %34 = arith.addf %31, %33 : vector<2x3xf32>
    %c0_29 = arith.constant 0 : index
    %c0_30 = arith.constant 0 : index
    %35 = vector.load %arg11[%c0_29, %c0_30] : memref<2x3xf32, #tpu.memory_space<vmem>>, vector<2x3xf32>
    tpu.vector_store %arg11[%c0_29, %c0_30], %34 {strides = array<i32>} : memref<2x3xf32, #tpu.memory_space<vmem>>, vector<2x3xf32>,
    %cst_31 = arith.constant dense<0xFF800000> : vector<2xf32>
    %36 = vector.multi_reduction <maximumf>, %34, %cst_31 [1] : vector<2x3xf32> to vector<2xf32>
    %37 = vector.shape_cast %36 : vector<2xf32> to vector<2x1xf32>
    %38 = vector.broadcast %37 : vector<2x1xf32> to vector<2x3xf32>
    %39 = arith.subf %34, %38 : vector<2x3xf32>
    %40 = math.exp %39 : vector<2x3xf32>
    %cst_32 = arith.constant dense<0.000000e+00> : vector<2xf32>
    %41 = vector.multi_reduction <add>, %40, %cst_32 [1] : vector<2x3xf32> to vector<2xf32>
    %42 = vector.shape_cast %41 : vector<2xf32> to vector<2x1xf32>
    %43 = tpu.reciprocal %42 : vector<2x1xf32> -> vector<2x1xf32>
    %44 = vector.broadcast %43 : vector<2x1xf32> to vector<2x3xf32>
    %45 = arith.mulf %40, %44 : vector<2x3xf32>
    %c0_33 = arith.constant 0 : index
    %c0_34 = arith.constant 0 : index
    %46 = vector.load %arg12[%c0_33, %c0_34] : memref<2x3xf32, #tpu.memory_space<vmem>>, vector<2x3xf32>
    tpu.vector_store %arg12[%c0_33, %c0_34], %45 {strides = array<i32>} : memref<2x3xf32, #tpu.memory_space<vmem>>, vector<2x3xf32>,
    %47 = math.log %42 : vector<2x1xf32>
    %48 = vector.broadcast %37 : vector<2x1xf32> to vector<2x3xf32>
    %49 = arith.subf %34, %48 : vector<2x3xf32>
    %50 = arith.mulf %45, %49 : vector<2x3xf32>
    %cst_35 = arith.constant dense<0.000000e+00> : vector<2xf32>
    %51 = vector.multi_reduction <add>, %50, %cst_35 [1] : vector<2x3xf32> to vector<2xf32>
    %52 = vector.shape_cast %51 : vector<2xf32> to vector<2x1xf32>
    %53 = arith.subf %47, %52 : vector<2x1xf32>
    %c0_36 = arith.constant 0 : index
    %c0_37 = arith.constant 0 : index
    %54 = vector.load %arg13[%c0_36, %c0_37] : memref<2x1xf32, #tpu.memory_space<vmem>>, vector<2x1xf32>
    tpu.vector_store %arg13[%c0_36, %c0_37], %53 {strides = array<i32>} : memref<2x1xf32, #tpu.memory_space<vmem>>, vector<2x1xf32>,
    return
  }
  func.func @transform_0(%arg0: i32) -> (i32, i32, i32) {
    %c0_i32 = arith.constant 0 : i32
    %c0_i32_0 = arith.constant 0 : i32
    %c0_i32_1 = arith.constant 0 : i32
    return %arg0, %c0_i32, %c0_i32_0 : i32, i32, i32
  }
  func.func @transform_1(%arg0: i32) -> (i32, i32, i32) {
    %c0_i32 = arith.constant 0 : i32
    %c0_i32_0 = arith.constant 0 : i32
    %c0_i32_1 = arith.constant 0 : i32
    return %arg0, %c0_i32, %c0_i32_0 : i32, i32, i32
  }
  func.func @transform_2(%arg0: i32) -> (i32, i32) {
    %c0_i32 = arith.constant 0 : i32
    %c0_i32_0 = arith.constant 0 : i32
    %c0_i32_1 = arith.constant 0 : i32
    return %c0_i32, %c0_i32_0 : i32, i32
  }
  func.func @transform_3(%arg0: i32) -> (i32, i32) {
    %c0_i32 = arith.constant 0 : i32
    %c0_i32_0 = arith.constant 0 : i32
    %c0_i32_1 = arith.constant 0 : i32
    return %c0_i32, %c0_i32_0 : i32, i32
  }
  func.func @transform_4(%arg0: i32) -> (i32, i32) {
    %c0_i32 = arith.constant 0 : i32
    %c0_i32_0 = arith.constant 0 : i32
    %c0_i32_1 = arith.constant 0 : i32
    return %c0_i32, %c0_i32_0 : i32, i32
  }
  func.func @transform_5(%arg0: i32) -> (i32, i32) {
    %c0_i32 = arith.constant 0 : i32
    %c0_i32_0 = arith.constant 0 : i32
    %c0_i32_1 = arith.constant 0 : i32
    return %c0_i32, %c0_i32_0 : i32, i32
  }
  func.func @transform_6(%arg0: i32) -> (i32, i32, i32) {
    %c0_i32 = arith.constant 0 : i32
    %c0_i32_0 = arith.constant 0 : i32
    %c0_i32_1 = arith.constant 0 : i32
    return %arg0, %c0_i32, %c0_i32_0 : i32, i32, i32
  }
  func.func @transform_7(%arg0: i32) -> (i32, i32, i32) {
    %c0_i32 = arith.constant 0 : i32
    %c0_i32_0 = arith.constant 0 : i32
    %c0_i32_1 = arith.constant 0 : i32
    return %arg0, %c0_i32, %c0_i32_0 : i32, i32, i32
  }
  func.func @transform_8(%arg0: i32) -> (i32, i32, i32) {
    %c0_i32 = arith.constant 0 : i32
    %c0_i32_0 = arith.constant 0 : i32
    %c0_i32_1 = arith.constant 0 : i32
    return %arg0, %c0_i32, %c0_i32_0 : i32, i32, i32
  }
  func.func @transform_9(%arg0: i32) -> (i32, i32, i32) {
    %c0_i32 = arith.constant 0 : i32
    %c0_i32_0 = arith.constant 0 : i32
    %c0_i32_1 = arith.constant 0 : i32
    return %arg0, %c0_i32, %c0_i32_0 : i32, i32, i32
  }
  func.func @transform_10(%arg0: i32) -> (i32, i32) {
    %c0_i32 = arith.constant 0 : i32
    %c0_i32_0 = arith.constant 0 : i32
    %c0_i32_1 = arith.constant 0 : i32
    return %c0_i32, %c0_i32_0 : i32, i32
  }
  func.func @transform_11(%arg0: i32) -> (i32, i32) {
    %c0_i32 = arith.constant 0 : i32
    %c0_i32_0 = arith.constant 0 : i32
    %c0_i32_1 = arith.constant 0 : i32
    return %c0_i32, %c0_i32_0 : i32, i32
  }
  func.func @transform_12(%arg0: i32) -> (i32, i32) {
    %c0_i32 = arith.constant 0 : i32
    %c0_i32_0 = arith.constant 0 : i32
    %c0_i32_1 = arith.constant 0 : i32
    return %c0_i32, %c0_i32_0 : i32, i32
  }
}

</mosaic_0001>

<bundles_post_ra>
// kernel: dgnetpp_forward_parts.1
= control target key start
LH: loop header
LB: loop body
LE: loop exit
PB: predicated region body
PF: predicated region fallthrough
CT: control target
= control target key end

     0   :  { %18 = vsyncpa [#allocation3], 0  ;;  %s4032_s0 = inlined_call_operand.vmem [shape: f32[2,3,256], index: 0, kind: input, shape index: {}]   ;;  %s4033_s1 = inlined_call_operand.vmem [shape: f32[2,3,256], index: 1, kind: input, shape index: {}]   ;;  %s4034_s2 = inlined_call_operand.vmem [shape: f32[256,1024], index: 2, kind: input, shape index: {}]   ;;  %s4035_s3 = inlined_call_operand.vmem [shape: f32[2,256], index: 3, kind: input, shape index: {}]   ;;  %s4036_s4 = inlined_call_operand.vmem [shape: f32[256,3], index: 4, kind: input, shape index: {}]   ;;  %s4037_s5 = inlined_call_operand.vmem [shape: f32[1,3], index: 5, kind: input, shape index: {}]   ;;  %s4038_s6 = inlined_call_operand.vmem [shape: f32[2,1,256], index: 6, kind: output, shape index: {0}]   ;;  %s4039_s7 = inlined_call_operand.vmem [shape: f32[2,3,1024], index: 7, kind: output, shape index: {1}]   ;;  %s4040_s8 = inlined_call_operand.vmem [shape: f32[2,1,256], index: 8, kind: output, shape index: {2}]   ;;  %s4041_s9 = inlined_call_operand.vmem [shape: f32[2,3,1024], index: 9, kind: output, shape index: {3}]   ;;  %s4042_s10 = inlined_call_operand.hbm [shape: f32[2,3], index: 10, kind: output, shape index: {4}]   ;;  %s4043_s11 = inlined_call_operand.hbm [shape: f32[2,3], index: 11, kind: output, shape index: {5}]   ;;  %s4044_s12 = inlined_call_operand.vmem [shape: f32[2,1], index: 12, kind: output, shape index: {6}]  }
   0x1   :  { %19 = vsyncpa [#allocation5], 0  ;;  %s1975_s21 = smov 0  }
   0x2 LB: > { %s1981_s22 = sadd.s32 4294967295, %s1905_s21   ;;  %p1750_p0 = scmp.ge.s32.totalorder %s1905_s21, 1  ;;  %s1905_s21 = sphi %s1975_s21, %s25_s21  }
   0x3   : > { %p372_p1 = scmp.lt.s32.totalorder %s1905_s21, 3 }
   0x5   : > { %p373_p2 = pnand %p1750_p0, %p372_p1 }
   0x7   : > { %376 = sbr.rel (%p373_p2) target bundleno = 960 (0x3c0), region = 44 }
   0xc   : > { %v1988_v0 = vld [vmem:[%s4034_s2 + $0x3c8] sm:$0xff]  ;;  %v1993_v1 = vld [vmem:[%s4034_s2 + $0x3c0] sm:$0xff]  ;;  %p432_p3 = scmp.lt.s32.totalorder %s1981_s22, 1  ;;  %v731_v20 = vlaneseq  ;;  %v1907_v22 = vmov 1966171168   ;;  %vm1509_vm1 = vcmask 17408  }
   0xd   : > { %v1998_v2 = vld [vmem:[%s4034_s2 + $0x388] sm:$0xff]  ;;  %750 = vmatprep.subr.mxu0 %v1988_v0  ;;  %v2004_v3 = vld [vmem:[%s4034_s2 + $0x380] sm:$0xff]  ;;  %v729_v23 = vunpack.c.l.s4 %v1907_v22  ;;  %p1820_p4 = scmp.eq.s32.totalorder %s1981_s22, 1  ;;  %s1909_s24 = smov [#allocation4]  }
   0xe   : > { %751 = vmatpush1.msra.mxu0 %v1993_v1  ;;  %v2010_v4 = vld [vmem:[%s4034_s2 + $0x348] sm:$0xff]  ;;  %v2016_v5 = vld [vmem:[%s4034_s2 + $0x340] sm:$0xff]  ;;  %s2068_s17 = scalar_select %p432_p3, %s1981_s22, 1  ;;  %v732_v28 = vshrl.u32 %v731_v20, 7  ;;  %vm2219_vm0 = vcmp.lt.s32.totalorder %v731_v20, 256 }
   0xf   : > { %752 = vmatprep.subr.mxu0 %v1998_v2  ;;  %v2022_v6 = vld [vmem:[%s4034_s2 + $0x308] sm:$0xff]  ;;  %v2028_v7 = vld [vmem:[%s4034_s2 + $0x300] sm:$0xff]  ;;  %v730_v32 = vunpack.c.0.s8 %v729_v23  ;;  %s1580_s27 = sshll.u32 %s1909_s24, 4  ;;  %s1581_s27 = int_to_ptr.vmem [resolvable:$true] %s1580_s27 }
  0x10   : > { %753 = vmatpush1.msra.mxu0 %v2004_v3  ;;  %v2034_v8 = vld [vmem:[%s4034_s2 + $0x2c8] sm:$0xff]  ;;  %v2040_v9 = vld [vmem:[%s4034_s2 + $0x2c0] sm:$0xff]  ;;  %s1773_s28 = sshll.u32 %s2068_s17, 3  ;;  %s1755_s13 = sshll.u32 %s2068_s17, 1 }
  0x11   : > { %754 = vmatprep.subr.mxu0 %v2010_v4  ;;  %v2047_v10 = vld [vmem:[%s4034_s2 + $0x288] sm:$0xff]  ;;  %v2053_v11 = vld [vmem:[%s4034_s2 + $0x280] sm:$0xff]  ;;  %s2118_s20 = scalar_lea.vmem %s4032_s0, %s1773_s28  ;;  %v2180_v40 = vsub.s32 %v730_v32, %v732_v28  ;;  %s445_s26 = scalar_lea.vmem %s4038_s6, %s1755_s13 }
  0x12   : > { %755 = vmatpush1.msra.mxu0 %v2016_v5  ;;  %v2059_v12 = vld [vmem:[%s4034_s2 + $0x248] sm:$0xff]  ;;  %v2065_v13 = vld [vmem:[%s4034_s2 + $0x240] sm:$0xff]  ;;  %s454_s14 = scalar_lea.vmem %s4040_s8, %s1755_s13  ;;  %s1775_s25 = sshll.u32 %s2068_s17, 5 }
  0x13   : > { %756 = vmatprep.subr.mxu0 %v2022_v6  ;;  %v2074_v14 = vld [vmem:[%s4034_s2 + $0x208] sm:$0xff]  ;;  %v2080_v15 = vld [vmem:[%s4034_s2 + $0x200] sm:$0xff]  ;;  %s2982_s19 = scalar_lea.vmem %s4039_s7, %s1775_s25  ;;  %s3250_s15 = scalar_lea.vmem %s4041_s9, %s1775_s25 }
  0x14   : > { %757 = vmatpush1.msra.mxu0 %v2028_v7  ;;  %v2086_v16 = vld [vmem:[%s4034_s2 + $0x1c8] sm:$0xff]  ;;  %v2092_v17 = vld [vmem:[%s4034_s2 + $0x1c0] sm:$0xff] }
  0x15   : > { %758 = vmatprep.subr.mxu0 %v2034_v8  ;;  %v2099_v18 = vld [vmem:[%s4034_s2 + $0x188] sm:$0xff]  ;;  %v2105_v19 = vld [vmem:[%s4034_s2 + $0x180] sm:$0xff] }
  0x16   : > { %759 = vmatpush1.msra.mxu0 %v2040_v9  ;;  %v2111_v21 = vld [vmem:[%s4034_s2 + $0x148] sm:$0xff]  ;;  %v2124_v24 = vld [vmem:[%s4034_s2 + $0x140] sm:$0xff] }
  0x17   : > { %760 = vmatprep.subr.mxu0 %v2047_v10  ;;  %v2130_v25 = vld [vmem:[%s4034_s2 + $0x108] sm:$0xff]  ;;  %v2136_v26 = vld [vmem:[%s4034_s2 + $0x100] sm:$0xff] }
  0x18   : > { %761 = vmatpush1.msra.mxu0 %v2053_v11  ;;  %v2139_v27 = vld [vmem:[%s2118_s20] sm:$0x77]  ;;  %v2145_v29 = vld [vmem:[%s4034_s2 + $0xc8] sm:$0xff] }
  0x19   : > { %762 = vmatprep.subr.mxu0 %v2059_v12  ;;  %v1761_v30 = vrot.slane %v2139_v27, 9  ;;  %v1762_v31 = vrot.slane %v2139_v27, 10  ;;  %v2151_v33 = vcombine.high %v2139_v27, %v2139_v27  ;;  %v2157_v34 = vld [vmem:[%s4034_s2 + $0xc0] sm:$0xff]  ;;  %v2163_v35 = vld [vmem:[%s4034_s2 + $0x88] sm:$0xff] }
  0x1a   : > { %763 = vmatpush1.msra.mxu0 %v2065_v13  ;;  %v2171_v37 = vld [vmem:[%s4034_s2 + $0x80] sm:$0xff]  ;;  %v2178_v38 = vld [vmem:[%s4034_s2 + $0x48] sm:$0xff] }
  0x1b   : > { %764 = vmatprep.subr.mxu0 %v2074_v14  ;;  %4185 = vst [vmem:[#allocation8_spill] sm:$0xff] %v2151_v33  ;;  %v721_v36 = vadd.f32 %v1761_v30, %v2139_v27  ;;  %814 = vmatprep.mubr.f32.mxu0 %v2151_v33  ;;  %v2186_v41 = vld [vmem:[%s4034_s2 + $0x40] sm:$0xff]  ;;  %v2192_v42 = vld [vmem:[%s4034_s2 + $0x8] sm:$0xff] }
  0x1c   : > { %765 = vmatpush1.msra.mxu0 %v2080_v15  ;;  %885 = vmatprep.mubr.f32.mxu1 %v2151_v33  ;;  %v2199_v44 = vld [vmem:[%s4034_s2] sm:$0xff]  ;;  %v2205_v45 = vld [vmem:[%s4034_s2 + $0x7c8] sm:$0xff] }
  0x1d   : > { %766 = vmatprep.subr.mxu0 %v2086_v16  ;;  %v725_v39 = vadd.f32 %v1762_v31, %v721_v36  ;;  %v2212_v47 = vld [vmem:[%s4034_s2 + $0x7c0] sm:$0xff]  ;;  %v2227_v49 = vld [vmem:[%s4034_s2 + $0x788] sm:$0xff] }
  0x1e   : > { %767 = vmatpush1.msra.mxu0 %v2092_v17  ;;  %v2234_v51 = vld [vmem:[%s4034_s2 + $0x780] sm:$0xff]  ;;  %v2240_v52 = vld [vmem:[%s4034_s2 + $0x748] sm:$0xff] }
  0x1f   : > { %768 = vmatprep.subr.mxu0 %v2099_v18  ;;  %v726_v43 = vmul.f32 0.33333334, %v725_v39  ;;  %v2248_v53 = vld [vmem:[%s4034_s2 + $0x740] sm:$0xff]  ;;  %v2254_v54 = vld [vmem:[%s4034_s2 + $0x708] sm:$0xff] }
  0x20   : > { %769 = vmatpush1.msra.mxu0 %v2105_v19  ;;  %v2260_v55 = vld [vmem:[%s4034_s2 + $0x700] sm:$0xff]  ;;  %v2266_v56 = vld [vmem:[%s4034_s2 + $0x6c8] sm:$0xff] }
  0x21   : > { %770 = vmatprep.subr.mxu0 %v2111_v21  ;;  %v734_v46 = vrot.slane %v726_v43, %v2180_v40  ;;  %v2272_v57 = vld [vmem:[%s4034_s2 + $0x6c0] sm:$0xff]  ;;  %v2278_v58 = vld [vmem:[%s4034_s2 + $0x688] sm:$0xff] }
  0x22   : > { %771 = vmatpush1.msra.mxu0 %v2124_v24  ;;  %v2284_v59 = vld [vmem:[%s4034_s2 + $0x680] sm:$0xff]  ;;  %v2290_v60 = vld [vmem:[%s4034_s2 + $0x648] sm:$0xff] }
  0x23   : > { %772 = vmatprep.subr.mxu0 %v2130_v25  ;;  %v741_v50 = vrot.slane %v734_v46, %v2180_v40  ;;  %v2296_v61 = vld [vmem:[%s4034_s2 + $0x640] sm:$0xff]  ;;  %v2302_v62 = vld [vmem:[%s4034_s2 + $0x608] sm:$0xff] }
  0x24   : > { %773 = vmatpush1.msra.mxu0 %v2136_v26  ;;  %v2308_v63 = vld [vmem:[%s4034_s2 + $0x600] sm:$0xff]  ;;  %v2314_v20 = vld [vmem:[%s4034_s2 + $0x5c8] sm:$0xff] }
  0x25   : > { %774 = vmatprep.subr.mxu0 %v2145_v29  ;;  %747 = vst.msk [vmem:[%s445_s26] sm:$0x3] %vm2219_vm0, %v741_v50  ;;  %v2320_v22 = vld [vmem:[%s4034_s2 + $0x5c0] sm:$0xff]  ;;  %v2326_v23 = vld [vmem:[%s4034_s2 + $0x588] sm:$0xff]  ;;  %s2405_s26 = scalar_lea.vmem %s4033_s1, %s1773_s28 }
  0x26   : > { %775 = vmatpush1.msra.mxu0 %v2157_v34  ;;  %4188 = vst [vmem:[#allocation9_spill] sm:$0xff] %v2326_v23  ;;  %v2332_v28 = vld [vmem:[%s4034_s2 + $0x580] sm:$0xff]  ;;  %v2338_v30 = vld [vmem:[%s4034_s2 + $0x548] sm:$0xff] }
  0x27   : > { %776 = vmatprep.subr.mxu0 %v2163_v35  ;;  %4189 = vst [vmem:[#allocation10_spill] sm:$0xff] %v2332_v28  ;;  %4190 = vst [vmem:[#allocation11_spill] sm:$0xff] %v2338_v30  ;;  %v2344_v31 = vld [vmem:[%s4034_s2 + $0x540] sm:$0xff]  ;;  %v2350_v32 = vld [vmem:[%s4034_s2 + $0x508] sm:$0xff] }
  0x28   : > { %777 = vmatpush1.msra.mxu0 %v2171_v37  ;;  %4191 = vst [vmem:[#allocation12_spill] sm:$0xff] %v2344_v31  ;;  %4192 = vst [vmem:[#allocation13_spill] sm:$0xff] %v2350_v32  ;;  %v2356_v36 = vld [vmem:[%s4034_s2 + $0x500] sm:$0xff]  ;;  %v2362_v39 = vld [vmem:[%s4034_s2 + $0x4c8] sm:$0xff] }
  0x29   : > { %778 = vmatprep.subr.mxu0 %v2178_v38  ;;  %4193 = vst [vmem:[#allocation14_spill] sm:$0xff] %v2356_v36  ;;  %4194 = vst [vmem:[#allocation15_spill] sm:$0xff] %v2362_v39  ;;  %v2368_v43 = vld [vmem:[%s4034_s2 + $0x4c0] sm:$0xff]  ;;  %v2374_v46 = vld [vmem:[%s4034_s2 + $0x488] sm:$0xff] }
  0x2a   : > { %779 = vmatpush1.msra.mxu0 %v2186_v41  ;;  %4195 = vst [vmem:[#allocation16_spill] sm:$0xff] %v2368_v43  ;;  %4196 = vst [vmem:[#allocation17_spill] sm:$0xff] %v2374_v46  ;;  %v2380_v50 = vld [vmem:[%s4034_s2 + $0x480] sm:$0xff] }
  0x2b   : > { %780 = vmatprep.subr.mxu0 %v2192_v42  ;;  %4197 = vst [vmem:[#allocation18_spill] sm:$0xff] %v2380_v50  ;;  %v2536_v48 = vld [vmem:[%s4034_s2 + $0x1e0] sm:$0xff] }
  0x2c   : > { %781 = vmatpush1.msra.mxu0 %v2199_v44  ;;  %4213 = vst [vmem:[#allocation34_spill] sm:$0xff] %v2536_v48 }
  0x2d   : > { %782 = vmatprep.subr.mxu0 %v2205_v45 }
  0x2e   : > { %783 = vmatpush2.msra.mxu0 %v2212_v47 }
  0x2f   : > { %784 = vmatprep.subr.mxu0 %v2227_v49 }
  0x30   : > { %785 = vmatpush2.msra.mxu0 %v2234_v51 }
  0x31   : > { %786 = vmatprep.subr.mxu0 %v2240_v52 }
  0x32   : > { %787 = vmatpush2.msra.mxu0 %v2248_v53 }
  0x33   : > { %788 = vmatprep.subr.mxu0 %v2254_v54 }
  0x34   : > { %789 = vmatpush2.msra.mxu0 %v2260_v55 }
  0x35   : > { %790 = vmatprep.subr.mxu0 %v2266_v56 }
  0x36   : > { %791 = vmatpush2.msra.mxu0 %v2272_v57 }
  0x37   : > { %792 = vmatprep.subr.mxu0 %v2278_v58 }
  0x38   : > { %793 = vmatpush2.msra.mxu0 %v2284_v59 }
  0x39   : > { %794 = vmatprep.subr.mxu0 %v2290_v60 }
  0x3a   : > { %795 = vmatpush2.msra.mxu0 %v2296_v61 }
  0x3b   : > { %796 = vmatprep.subr.mxu0 %v2302_v62 }
  0x3c   : > { %797 = vmatpush2.msra.mxu0 %v2308_v63 }
  0x3d   : > { %798 = vmatprep.subr.mxu0 %v2314_v20 }
  0x3e   : > { %799 = vmatpush2.msra.mxu0 %v2320_v22 }
  0x3f   : > { %800 = vmatprep.subr.mxu0 %v2326_v23 }
  0x40   : > { %801 = vmatpush2.msra.mxu0 %v2332_v28 }
  0x41   : > { %802 = vmatprep.subr.mxu0 %v2338_v30 }
  0x42   : > { %803 = vmatpush2.msra.mxu0 %v2344_v31 }
  0x43   : > { %804 = vmatprep.subr.mxu0 %v2350_v32  ;;  %v2386_v32 = vld [vmem:[%s4034_s2 + $0x448] sm:$0xff] }
  0x44   : > { %805 = vmatpush2.msra.mxu0 %v2356_v36  ;;  %4198 = vst [vmem:[#allocation19_spill] sm:$0xff] %v2386_v32  ;;  %v2392_v36 = vld [vmem:[%s4034_s2 + $0x440] sm:$0xff] }
  0x45   : > { %806 = vmatprep.subr.mxu0 %v2362_v39  ;;  %4199 = vst [vmem:[#allocation20_spill] sm:$0xff] %v2392_v36  ;;  %v2398_v39 = vld [vmem:[%s4034_s2 + $0x408] sm:$0xff] }
  0x46   : > { %807 = vmatpush2.msra.mxu0 %v2368_v43  ;;  %4200 = vst [vmem:[#allocation21_spill] sm:$0xff] %v2398_v39  ;;  %v2423_v43 = vld [vmem:[%s4034_s2 + $0x3e0] sm:$0xff] }
  0x47   : > { %808 = vmatprep.subr.mxu0 %v2374_v46  ;;  %v2411_v46 = vld [vmem:[%s4034_s2 + $0x400] sm:$0xff]  ;;  %4203 = vst [vmem:[#allocation24_spill] sm:$0xff] %v2423_v43 }
  0x48   : > { %809 = vmatpush2.msra.mxu0 %v2380_v50  ;;  %4201 = vst [vmem:[#allocation22_spill] sm:$0xff] %v2411_v46  ;;  %v2417_v50 = vld [vmem:[%s4034_s2 + $0x3e8] sm:$0xff] }
  0x49   : > { %810 = vmatprep.subr.mxu0 %v2386_v32  ;;  %4202 = vst [vmem:[#allocation23_spill] sm:$0xff] %v2417_v50  ;;  %v2426_v32 = vld [vmem:[%s2405_s26] sm:$0x77] }
  0x4a   : > { %811 = vmatpush2.msra.mxu0 %v2392_v36  ;;  %v2432_v36 = vld [vmem:[%s4034_s2 + $0x3a8] sm:$0xff]  ;;  %v1763_v31 = vrot.slane %v2426_v32, 9  ;;  %v1764_v30 = vrot.slane %v2426_v32, 10 }
  0x4b   : > { %812 = vmatprep.subr.mxu0 %v2398_v39  ;;  %v2441_v39 = vld [vmem:[%s4034_s2 + $0x3a0] sm:$0xff] }
  0x4c   : > { %813 = vmatpush2.msra.mxu0 %v2411_v46  ;;  %4204 = vst [vmem:[#allocation25_spill] sm:$0xff] %v2441_v39  ;;  %v2447_v46 = vld [vmem:[%s4034_s2 + $0x368] sm:$0xff]  ;;  %v1059_v28 = vadd.f32 %v1763_v31, %v2426_v32  ;;  %v2467_v31 = vld [vmem:[%s4034_s2 + $0x320] sm:$0xff] }
  0x4d   : > { %815 = vmatmul.mubr.f32.vlgmr.msra.gmra.mxu0 %v2139_v27  ;;  %892 = vmatprep.subr.mxu0 %v2417_v50  ;;  %v2455_v50 = vld [vmem:[%s4034_s2 + $0x360] sm:$0xff]  ;;  %4206 = vst [vmem:[#allocation27_spill] sm:$0xff] %v2467_v31 }
  0x4e   : > { %893 = vmatpush1.msra.mxu0 %v2423_v43  ;;  %956 = vmatprep.mubr.f32.mxu0 %v2151_v33  ;;  %4205 = vst [vmem:[#allocation26_spill] sm:$0xff] %v2455_v50  ;;  %v2461_v43 = vld [vmem:[%s4034_s2 + $0x328] sm:$0xff]  ;;  %v1063_v23 = vadd.f32 %v1764_v30, %v1059_v28  ;;  %v2479_v28 = vld [vmem:[%s4034_s2 + $0x2e0] sm:$0xff] }
  0x4f   : > { %894 = vmatprep.subr.mxu0 %v2432_v36  ;;  %v2473_v33 = vld [vmem:[%s4034_s2 + $0x2e8] sm:$0xff]  ;;  %4208 = vst [vmem:[#allocation29_spill] sm:$0xff] %v2479_v28 }
  0x50   : > { %895 = vmatpush1.msra.mxu0 %v2441_v39  ;;  %4207 = vst [vmem:[#allocation28_spill] sm:$0xff] %v2473_v33  ;;  %v1064_v39 = vmul.f32 0.33333334, %v1063_v23  ;;  %v2485_v30 = vld [vmem:[%s4034_s2 + $0x2a8] sm:$0xff]  ;;  %v2497_v23 = vld [vmem:[%s4034_s2 + $0x2a0] sm:$0xff] }
  0x51   : > { %896 = vmatprep.subr.mxu0 %v2447_v46 }
  0x52   : > { %897 = vmatpush1.msra.mxu0 %v2455_v50  ;;  %v1072_v50 = vrot.slane %v1064_v39, %v2180_v40 }
  0x53   : > { %898 = vmatprep.subr.mxu0 %v2461_v43 }
  0x54   : > { %899 = vmatpush1.msra.mxu0 %v2467_v31  ;;  %v2503_v31 = vld [vmem:[%s4034_s2 + $0x268] sm:$0xff]  ;;  %v1079_v39 = vrot.slane %v1072_v50, %v2180_v40  ;;  %v2524_v40 = vld [vmem:[%s4034_s2 + $0x220] sm:$0xff] }
  0x55   : > { %900 = vmatprep.subr.mxu0 %v2473_v33  ;;  %v2510_v33 = vld [vmem:[%s4034_s2 + $0x260] sm:$0xff]  ;;  %4211 = vst [vmem:[#allocation32_spill] sm:$0xff] %v2524_v40  ;;  %v2530_v50 = vld [vmem:[%s4034_s2 + $0x1e8] sm:$0xff] }
  0x56   : > { %901 = vmatpush1.msra.mxu0 %v2479_v28  ;;  %4209 = vst [vmem:[#allocation30_spill] sm:$0xff] %v2510_v33  ;;  %v2516_v28 = vld [vmem:[%s4034_s2 + $0x228] sm:$0xff]  ;;  %1081 = vst.msk [vmem:[%s454_s14] sm:$0x3] %vm2219_vm0, %v1079_v39 }
  0x57   : > { %902 = vmatprep.subr.mxu0 %v2485_v30  ;;  %4210 = vst [vmem:[#allocation31_spill] sm:$0xff] %v2516_v28  ;;  %4212 = vst [vmem:[#allocation33_spill] sm:$0xff] %v2530_v50  ;;  %v2542_v39 = vld [vmem:[%s4034_s2 + $0x1a8] sm:$0xff] }
  0x58   : > { %903 = vmatpush1.msra.mxu0 %v2497_v23  ;;  %4214 = vst [vmem:[#allocation35_spill] sm:$0xff] %v2542_v39 }
  0x59   : > { %904 = vmatprep.subr.mxu0 %v2503_v31 }
  0x5a   : > { %905 = vmatpush1.msra.mxu0 %v2510_v33  ;;  %v2548_v33 = vld [vmem:[%s4034_s2 + $0x1a0] sm:$0xff] }
  0x5b   : > { %906 = vmatprep.subr.mxu0 %v2516_v28  ;;  %4215 = vst [vmem:[#allocation36_spill] sm:$0xff] %v2548_v33  ;;  %v2554_v28 = vld [vmem:[%s4034_s2 + $0x168] sm:$0xff] }
  0x5c   : > { %907 = vmatpush1.msra.mxu0 %v2524_v40  ;;  %4216 = vst [vmem:[#allocation37_spill] sm:$0xff] %v2554_v28  ;;  %v2560_v40 = vld [vmem:[%s4034_s2 + $0x160] sm:$0xff] }
  0x5d   : > { %908 = vmatprep.subr.mxu0 %v2530_v50  ;;  %4217 = vst [vmem:[#allocation38_spill] sm:$0xff] %v2560_v40  ;;  %v2566_v50 = vld [vmem:[%s4034_s2 + $0x128] sm:$0xff] }
  0x5e   : > { %909 = vmatpush1.msra.mxu0 %v2536_v48  ;;  %4218 = vst [vmem:[#allocation39_spill] sm:$0xff] %v2566_v50  ;;  %v2572_v48 = vld [vmem:[%s4034_s2 + $0x120] sm:$0xff] }
  0x5f   : > { %910 = vmatprep.subr.mxu0 %v2542_v39  ;;  %4219 = vst [vmem:[#allocation40_spill] sm:$0xff] %v2572_v48  ;;  %v2578_v39 = vld [vmem:[%s4034_s2 + $0xe8] sm:$0xff] }
  0x60   : > { %911 = vmatpush1.msra.mxu0 %v2548_v33  ;;  %4220 = vst [vmem:[#allocation41_spill] sm:$0xff] %v2578_v39  ;;  %v2584_v33 = vld [vmem:[%s4034_s2 + $0xe0] sm:$0xff] }
  0x61   : > { %912 = vmatprep.subr.mxu0 %v2554_v28  ;;  %4221 = vst [vmem:[#allocation42_spill] sm:$0xff] %v2584_v33  ;;  %v2590_v28 = vld [vmem:[%s4034_s2 + $0xa8] sm:$0xff] }
  0x62   : > { %913 = vmatpush1.msra.mxu0 %v2560_v40  ;;  %4222 = vst [vmem:[#allocation43_spill] sm:$0xff] %v2590_v28  ;;  %v2596_v40 = vld [vmem:[%s4034_s2 + $0xa0] sm:$0xff] }
  0x63   : > { %914 = vmatprep.subr.mxu0 %v2566_v50  ;;  %4223 = vst [vmem:[#allocation44_spill] sm:$0xff] %v2596_v40  ;;  %v2602_v50 = vld [vmem:[%s4034_s2 + $0x68] sm:$0xff] }
  0x64   : > { %915 = vmatpush1.msra.mxu0 %v2572_v48  ;;  %4224 = vst [vmem:[#allocation45_spill] sm:$0xff] %v2602_v50  ;;  %v2608_v48 = vld [vmem:[%s4034_s2 + $0x60] sm:$0xff] }
  0x65   : > { %916 = vmatprep.subr.mxu0 %v2578_v39  ;;  %4225 = vst [vmem:[#allocation46_spill] sm:$0xff] %v2608_v48  ;;  %v2614_v39 = vld [vmem:[%s4034_s2 + $0x28] sm:$0xff] }
  0x66   : > { %917 = vmatpush1.msra.mxu0 %v2584_v33  ;;  %4226 = vst [vmem:[#allocation47_spill] sm:$0xff] %v2614_v39  ;;  %v2620_v33 = vld [vmem:[%s4034_s2 + $0x20] sm:$0xff] }
  0x67   : > { %918 = vmatprep.subr.mxu0 %v2590_v28  ;;  %4227 = vst [vmem:[#allocation48_spill] sm:$0xff] %v2620_v33  ;;  %v2626_v28 = vld [vmem:[%s4034_s2 + $0x7e8] sm:$0xff] }
  0x68   : > { %919 = vmatpush1.msra.mxu0 %v2596_v40  ;;  %4228 = vst [vmem:[#allocation49_spill] sm:$0xff] %v2626_v28  ;;  %v2632_v40 = vld [vmem:[%s4034_s2 + $0x7e0] sm:$0xff] }
  0x69   : > { %920 = vmatprep.subr.mxu0 %v2602_v50  ;;  %4229 = vst [vmem:[#allocation50_spill] sm:$0xff] %v2632_v40  ;;  %v2638_v50 = vld [vmem:[%s4034_s2 + $0x7a8] sm:$0xff] }
  0x6a   : > { %921 = vmatpush1.msra.mxu0 %v2608_v48  ;;  %4230 = vst [vmem:[#allocation51_spill] sm:$0xff] %v2638_v50  ;;  %v2644_v48 = vld [vmem:[%s4034_s2 + $0x7a0] sm:$0xff] }
  0x6b   : > { %922 = vmatprep.subr.mxu0 %v2614_v39  ;;  %4231 = vst [vmem:[#allocation52_spill] sm:$0xff] %v2644_v48  ;;  %v2650_v39 = vld [vmem:[%s4034_s2 + $0x768] sm:$0xff] }
  0x6c   : > { %923 = vmatpush1.msra.mxu0 %v2620_v33  ;;  %4232 = vst [vmem:[#allocation53_spill] sm:$0xff] %v2650_v39  ;;  %v2656_v33 = vld [vmem:[%s4034_s2 + $0x760] sm:$0xff] }
  0x6d   : > { %924 = vmatprep.subr.mxu0 %v2626_v28  ;;  %4233 = vst [vmem:[#allocation54_spill] sm:$0xff] %v2656_v33  ;;  %v2662_v28 = vld [vmem:[%s4034_s2 + $0x728] sm:$0xff] }
  0x6e   : > { %925 = vmatpush2.msra.mxu0 %v2632_v40  ;;  %4234 = vst [vmem:[#allocation55_spill] sm:$0xff] %v2662_v28  ;;  %v2668_v40 = vld [vmem:[%s4034_s2 + $0x720] sm:$0xff] }
  0x6f   : > { %926 = vmatprep.subr.mxu0 %v2638_v50  ;;  %4235 = vst [vmem:[#allocation56_spill] sm:$0xff] %v2668_v40  ;;  %v2674_v50 = vld [vmem:[%s4034_s2 + $0x6e8] sm:$0xff] }
  0x70   : > { %927 = vmatpush2.msra.mxu0 %v2644_v48  ;;  %4236 = vst [vmem:[#allocation57_spill] sm:$0xff] %v2674_v50  ;;  %v2680_v48 = vld [vmem:[%s4034_s2 + $0x6e0] sm:$0xff] }
  0x71   : > { %928 = vmatprep.subr.mxu0 %v2650_v39  ;;  %4237 = vst [vmem:[#allocation58_spill] sm:$0xff] %v2680_v48  ;;  %v2686_v39 = vld [vmem:[%s4034_s2 + $0x6a8] sm:$0xff] }
  0x72   : > { %929 = vmatpush2.msra.mxu0 %v2656_v33  ;;  %4238 = vst [vmem:[#allocation59_spill] sm:$0xff] %v2686_v39  ;;  %v2692_v33 = vld [vmem:[%s4034_s2 + $0x6a0] sm:$0xff] }
  0x73   : > { %930 = vmatprep.subr.mxu0 %v2662_v28  ;;  %4239 = vst [vmem:[#allocation60_spill] sm:$0xff] %v2692_v33  ;;  %v2698_v28 = vld [vmem:[%s4034_s2 + $0x668] sm:$0xff] }
  0x74   : > { %931 = vmatpush2.msra.mxu0 %v2668_v40  ;;  %4240 = vst [vmem:[#allocation61_spill] sm:$0xff] %v2698_v28  ;;  %v2704_v40 = vld [vmem:[%s4034_s2 + $0x660] sm:$0xff] }
  0x75   : > { %932 = vmatprep.subr.mxu0 %v2674_v50  ;;  %4241 = vst [vmem:[#allocation62_spill] sm:$0xff] %v2704_v40  ;;  %v2710_v50 = vld [vmem:[%s4034_s2 + $0x628] sm:$0xff] }
  0x76   : > { %933 = vmatpush2.msra.mxu0 %v2680_v48  ;;  %4242 = vst [vmem:[#allocation63_spill] sm:$0xff] %v2710_v50  ;;  %v2716_v48 = vld [vmem:[%s4034_s2 + $0x620] sm:$0xff] }
  0x77   : > { %934 = vmatprep.subr.mxu0 %v2686_v39  ;;  %4243 = vst [vmem:[#allocation64_spill] sm:$0xff] %v2716_v48  ;;  %v2722_v39 = vld [vmem:[%s4034_s2 + $0x5e8] sm:$0xff] }
  0x78   : > { %935 = vmatpush2.msra.mxu0 %v2692_v33  ;;  %4244 = vst [vmem:[#allocation65_spill] sm:$0xff] %v2722_v39  ;;  %v2728_v33 = vld [vmem:[%s4034_s2 + $0x5e0] sm:$0xff] }
  0x79   : > { %936 = vmatprep.subr.mxu0 %v2698_v28  ;;  %4245 = vst [vmem:[#allocation66_spill] sm:$0xff] %v2728_v33  ;;  %v2734_v28 = vld [vmem:[%s4034_s2 + $0x5a8] sm:$0xff] }
  0x7a   : > { %937 = vmatpush2.msra.mxu0 %v2704_v40  ;;  %4246 = vst [vmem:[#allocation67_spill] sm:$0xff] %v2734_v28  ;;  %v2740_v40 = vld [vmem:[%s4034_s2 + $0x5a0] sm:$0xff] }
  0x7b   : > { %938 = vmatprep.subr.mxu0 %v2710_v50  ;;  %4247 = vst [vmem:[#allocation68_spill] sm:$0xff] %v2740_v40  ;;  %v2746_v50 = vld [vmem:[%s4034_s2 + $0x568] sm:$0xff] }
  0x7c   : > { %939 = vmatpush2.msra.mxu0 %v2716_v48  ;;  %4248 = vst [vmem:[#allocation69_spill] sm:$0xff] %v2746_v50  ;;  %v2752_v48 = vld [vmem:[%s4034_s2 + $0x560] sm:$0xff] }
  0x7d   : > { %940 = vmatprep.subr.mxu0 %v2722_v39  ;;  %4249 = vst [vmem:[#allocation70_spill] sm:$0xff] %v2752_v48  ;;  %v2758_v39 = vld [vmem:[%s4034_s2 + $0x528] sm:$0xff] }
  0x7e   : > { %941 = vmatpush2.msra.mxu0 %v2728_v33  ;;  %4250 = vst [vmem:[#allocation71_spill] sm:$0xff] %v2758_v39  ;;  %v2764_v33 = vld [vmem:[%s4034_s2 + $0x520] sm:$0xff] }
  0x7f   : > { %942 = vmatprep.subr.mxu0 %v2734_v28  ;;  %4251 = vst [vmem:[#allocation72_spill] sm:$0xff] %v2764_v33  ;;  %v2770_v28 = vld [vmem:[%s4034_s2 + $0x4e8] sm:$0xff] }
  0x80   : > { %943 = vmatpush2.msra.mxu0 %v2740_v40  ;;  %4252 = vst [vmem:[#allocation73_spill] sm:$0xff] %v2770_v28  ;;  %v2776_v40 = vld [vmem:[%s4034_s2 + $0x4e0] sm:$0xff] }
  0x81   : > { %944 = vmatprep.subr.mxu0 %v2746_v50  ;;  %4253 = vst [vmem:[#allocation74_spill] sm:$0xff] %v2776_v40  ;;  %v2782_v50 = vld [vmem:[%s4034_s2 + $0x4a8] sm:$0xff] }
  0x82   : > { %945 = vmatpush2.msra.mxu0 %v2752_v48  ;;  %4254 = vst [vmem:[#allocation75_spill] sm:$0xff] %v2782_v50  ;;  %v2788_v48 = vld [vmem:[%s4034_s2 + $0x4a0] sm:$0xff] }
  0x83   : > { %946 = vmatprep.subr.mxu0 %v2758_v39  ;;  %v2794_v39 = vld [vmem:[%s4034_s2 + $0x468] sm:$0xff] }
  0x84   : > { %947 = vmatpush2.msra.mxu0 %v2764_v33  ;;  %v2800_v33 = vld [vmem:[%s4034_s2 + $0x460] sm:$0xff] }
  0x85   : > { %948 = vmatprep.subr.mxu0 %v2770_v28  ;;  %v2806_v28 = vld [vmem:[%s4034_s2 + $0x428] sm:$0xff] }
  0x86   : > { %949 = vmatpush2.msra.mxu0 %v2776_v40  ;;  %v2812_v40 = vld [vmem:[%s4034_s2 + $0x420] sm:$0xff] }
  0x87   : > { %950 = vmatprep.subr.mxu0 %v2782_v50  ;;  %v2817_v50 = vcombine.high %v2426_v32, %v2426_v32 }
  0x88   : > { %951 = vmatpush2.msra.mxu0 %v2788_v48 }
  0x89   : > { %952 = vmatprep.subr.mxu0 %v2794_v39 }
  0x8a   : > { %953 = vmatpush2.msra.mxu0 %v2800_v33 }
  0x8b   : > { %954 = vmatprep.subr.mxu0 %v2806_v28 }
  0x8c   : > { %955 = vmatpush2.msra.mxu0 %v2812_v40 }
  0x8d   : > { %957 = vmatmul.mubr.f32.vlgmr.msra.gmra.mxu0 %v2139_v27  ;;  %1084 = vmatprep.subr.mxu0 %v1988_v0  ;;  %v4255_v0 = vld [vmem:[#allocation9_spill] sm:$0xff] }
  0x8e   : > { %1085 = vmatpush1.msra.mxu0 %v1993_v1  ;;  %1148 = vmatprep.mubr.f32.mxu0 %v2817_v50  ;;  %v4256_v1 = vld [vmem:[#allocation10_spill] sm:$0xff]  ;;  %v4279_v27 = vld [vmem:[#allocation33_spill] sm:$0xff] }
  0x8f   : > { %1086 = vmatprep.subr.mxu0 %v1998_v2  ;;  %v4257_v2 = vld [vmem:[#allocation11_spill] sm:$0xff] }
  0x90   : > { %1087 = vmatpush1.msra.mxu0 %v2004_v3  ;;  %v4258_v3 = vld [vmem:[#allocation12_spill] sm:$0xff] }
  0x91   : > { %1088 = vmatprep.subr.mxu0 %v2010_v4  ;;  %v4259_v4 = vld [vmem:[#allocation13_spill] sm:$0xff] }
  0x92   : > { %1089 = vmatpush1.msra.mxu0 %v2016_v5  ;;  %v4260_v5 = vld [vmem:[#allocation14_spill] sm:$0xff] }
  0x93   : > { %1090 = vmatprep.subr.mxu0 %v2022_v6  ;;  %v4261_v6 = vld [vmem:[#allocation15_spill] sm:$0xff] }
  0x94   : > { %1091 = vmatpush1.msra.mxu0 %v2028_v7  ;;  %v4262_v7 = vld [vmem:[#allocation16_spill] sm:$0xff] }
  0x95   : > { %1092 = vmatprep.subr.mxu0 %v2034_v8  ;;  %v4263_v8 = vld [vmem:[#allocation17_spill] sm:$0xff] }
  0x96   : > { %1093 = vmatpush1.msra.mxu0 %v2040_v9  ;;  %v4264_v9 = vld [vmem:[#allocation18_spill] sm:$0xff] }
  0x97   : > { %1094 = vmatprep.subr.mxu0 %v2047_v10  ;;  %v4265_v10 = vld [vmem:[#allocation19_spill] sm:$0xff] }
  0x98   : > { %1095 = vmatpush1.msra.mxu0 %v2053_v11  ;;  %v4266_v11 = vld [vmem:[#allocation20_spill] sm:$0xff] }
  0x99   : > { %1096 = vmatprep.subr.mxu0 %v2059_v12  ;;  %v4267_v12 = vld [vmem:[#allocation21_spill] sm:$0xff] }
  0x9a   : > { %1097 = vmatpush1.msra.mxu0 %v2065_v13  ;;  %v4268_v13 = vld [vmem:[#allocation22_spill] sm:$0xff] }
  0x9b   : > { %1098 = vmatprep.subr.mxu0 %v2074_v14  ;;  %v4269_v14 = vld [vmem:[#allocation23_spill] sm:$0xff] }
  0x9c   : > { %1099 = vmatpush1.msra.mxu0 %v2080_v15  ;;  %v4270_v15 = vld [vmem:[#allocation24_spill] sm:$0xff] }
  0x9d   : > { %1100 = vmatprep.subr.mxu0 %v2086_v16  ;;  %v4271_v16 = vld [vmem:[#allocation25_spill] sm:$0xff] }
  0x9e   : > { %1101 = vmatpush1.msra.mxu0 %v2092_v17  ;;  %v4272_v17 = vld [vmem:[#allocation26_spill] sm:$0xff] }
  0x9f   : > { %1102 = vmatprep.subr.mxu0 %v2099_v18  ;;  %v4273_v18 = vld [vmem:[#allocation27_spill] sm:$0xff] }
  0xa0   : > { %1103 = vmatpush1.msra.mxu0 %v2105_v19  ;;  %v4274_v19 = vld [vmem:[#allocation28_spill] sm:$0xff] }
  0xa1   : > { %1104 = vmatprep.subr.mxu0 %v2111_v21  ;;  %v4275_v21 = vld [vmem:[#allocation29_spill] sm:$0xff] }
  0xa2   : > { %1105 = vmatpush1.msra.mxu0 %v2124_v24  ;;  %v4276_v24 = vld [vmem:[#allocation30_spill] sm:$0xff] }
  0xa3   : > { %1106 = vmatprep.subr.mxu0 %v2130_v25  ;;  %v4277_v25 = vld [vmem:[#allocation31_spill] sm:$0xff] }
  0xa4   : > { %1107 = vmatpush1.msra.mxu0 %v2136_v26  ;;  %v4278_v26 = vld [vmem:[#allocation32_spill] sm:$0xff] }
  0xa5   : > { %1108 = vmatprep.subr.mxu0 %v2145_v29  ;;  %v4280_v29 = vld [vmem:[#allocation34_spill] sm:$0xff] }
  0xa6   : > { %1109 = vmatpush1.msra.mxu0 %v2157_v34  ;;  %v4281_v34 = vld [vmem:[#allocation35_spill] sm:$0xff] }
  0xa7   : > { %1110 = vmatprep.subr.mxu0 %v2163_v35  ;;  %v4282_v35 = vld [vmem:[#allocation36_spill] sm:$0xff] }
  0xa8   : > { %1111 = vmatpush1.msra.mxu0 %v2171_v37  ;;  %v4283_v37 = vld [vmem:[#allocation37_spill] sm:$0xff] }
  0xa9   : > { %1112 = vmatprep.subr.mxu0 %v2178_v38  ;;  %v4284_v38 = vld [vmem:[#allocation38_spill] sm:$0xff] }
  0xaa   : > { %1113 = vmatpush1.msra.mxu0 %v2186_v41  ;;  %v4285_v41 = vld [vmem:[#allocation39_spill] sm:$0xff] }
  0xab   : > { %1114 = vmatprep.subr.mxu0 %v2192_v42  ;;  %v4286_v42 = vld [vmem:[#allocation40_spill] sm:$0xff] }
  0xac   : > { %1115 = vmatpush1.msra.mxu0 %v2199_v44  ;;  %v4287_v44 = vld [vmem:[#allocation41_spill] sm:$0xff] }
  0xad   : > { %1116 = vmatprep.subr.mxu0 %v2205_v45  ;;  %v4288_v45 = vld [vmem:[#allocation42_spill] sm:$0xff] }
  0xae   : > { %1117 = vmatpush2.msra.mxu0 %v2212_v47  ;;  %v4289_v47 = vld [vmem:[#allocation43_spill] sm:$0xff] }
  0xaf   : > { %1118 = vmatprep.subr.mxu0 %v2227_v49  ;;  %v4290_v49 = vld [vmem:[#allocation44_spill] sm:$0xff] }
  0xb0   : > { %1119 = vmatpush2.msra.mxu0 %v2234_v51  ;;  %v4291_v51 = vld [vmem:[#allocation45_spill] sm:$0xff] }
  0xb1   : > { %1120 = vmatprep.subr.mxu0 %v2240_v52  ;;  %v4292_v52 = vld [vmem:[#allocation46_spill] sm:$0xff] }
  0xb2   : > { %1121 = vmatpush2.msra.mxu0 %v2248_v53  ;;  %v4293_v53 = vld [vmem:[#allocation47_spill] sm:$0xff] }
  0xb3   : > { %1122 = vmatprep.subr.mxu0 %v2254_v54  ;;  %v4294_v54 = vld [vmem:[#allocation48_spill] sm:$0xff] }
  0xb4   : > { %1123 = vmatpush2.msra.mxu0 %v2260_v55  ;;  %v4295_v55 = vld [vmem:[#allocation49_spill] sm:$0xff] }
  0xb5   : > { %1124 = vmatprep.subr.mxu0 %v2266_v56  ;;  %v4296_v56 = vld [vmem:[#allocation50_spill] sm:$0xff] }
  0xb6   : > { %1125 = vmatpush2.msra.mxu0 %v2272_v57  ;;  %v4297_v57 = vld [vmem:[#allocation51_spill] sm:$0xff] }
  0xb7   : > { %1126 = vmatprep.subr.mxu0 %v2278_v58  ;;  %v4298_v58 = vld [vmem:[#allocation52_spill] sm:$0xff] }
  0xb8   : > { %1127 = vmatpush2.msra.mxu0 %v2284_v59  ;;  %v4299_v59 = vld [vmem:[#allocation53_spill] sm:$0xff] }
  0xb9   : > { %1128 = vmatprep.subr.mxu0 %v2290_v60  ;;  %v4300_v60 = vld [vmem:[#allocation54_spill] sm:$0xff] }
  0xba   : > { %1129 = vmatpush2.msra.mxu0 %v2296_v61  ;;  %v4301_v61 = vld [vmem:[#allocation55_spill] sm:$0xff] }
  0xbb   : > { %1130 = vmatprep.subr.mxu0 %v2302_v62  ;;  %v4302_v62 = vld [vmem:[#allocation56_spill] sm:$0xff] }
  0xbc   : > { %1131 = vmatpush2.msra.mxu0 %v2308_v63  ;;  %v4303_v63 = vld [vmem:[#allocation57_spill] sm:$0xff] }
  0xbd   : > { %1132 = vmatprep.subr.mxu0 %v2314_v20  ;;  %v4304_v20 = vld [vmem:[#allocation58_spill] sm:$0xff] }
  0xbe   : > { %1133 = vmatpush2.msra.mxu0 %v2320_v22  ;;  %v4305_v22 = vld [vmem:[#allocation59_spill] sm:$0xff] }
  0xbf   : > { %1134 = vmatprep.subr.mxu0 %v4255_v0  ;;  %v4312_v0 = vld [vmem:[#allocation66_spill] sm:$0xff] }
  0xc0   : > { %1135 = vmatpush2.msra.mxu0 %v4256_v1  ;;  %v4313_v1 = vld [vmem:[#allocation67_spill] sm:$0xff] }
  0xc1   : > { %1136 = vmatprep.subr.mxu0 %v4257_v2  ;;  %v4314_v2 = vld [vmem:[#allocation68_spill] sm:$0xff] }
  0xc2   : > { %1137 = vmatpush2.msra.mxu0 %v4258_v3  ;;  %v4315_v3 = vld [vmem:[#allocation69_spill] sm:$0xff] }
  0xc3   : > { %1138 = vmatprep.subr.mxu0 %v4259_v4  ;;  %v4316_v4 = vld [vmem:[#allocation70_spill] sm:$0xff] }
  0xc4   : > { %1139 = vmatpush2.msra.mxu0 %v4260_v5  ;;  %v4317_v5 = vld [vmem:[#allocation71_spill] sm:$0xff] }
  0xc5   : > { %1140 = vmatprep.subr.mxu0 %v4261_v6  ;;  %v4318_v6 = vld [vmem:[#allocation72_spill] sm:$0xff] }
  0xc6   : > { %1141 = vmatpush2.msra.mxu0 %v4262_v7  ;;  %v4319_v7 = vld [vmem:[#allocation73_spill] sm:$0xff] }
  0xc7   : > { %1142 = vmatprep.subr.mxu0 %v4263_v8  ;;  %v4320_v8 = vld [vmem:[#allocation74_spill] sm:$0xff] }
  0xc8   : > { %1143 = vmatpush2.msra.mxu0 %v4264_v9  ;;  %v4321_v9 = vld [vmem:[#allocation75_spill] sm:$0xff] }
  0xc9   : > { %1144 = vmatprep.subr.mxu0 %v4265_v10  ;;  %v2951_v10 = vld.sshfl [vmem:[%s4035_s3] sm:$0x33 pattern:$0x76325410] }
  0xca   : > { %1145 = vmatpush2.msra.mxu0 %v4266_v11  ;;  %v1420_v11 = vld [vmem:[%s4036_s4 + $0xf8] sm:$0xff] }
  0xcb   : > { %1146 = vmatprep.subr.mxu0 %v4267_v12  ;;  %v1436_v12 = vcombine.high %v2951_v10, %v2951_v10 }
  0xcc   : > { %1147 = vmatpush2.msra.mxu0 %v4268_v13  ;;  %v1404_v13 = vld [vmem:[%s4036_s4 + $0x78] sm:$0xff] }
  0xcd   : > { %1149 = vmatmul.mubr.f32.vlgmr.msra.gmra.mxu0 %v2426_v32  ;;  %1226 = vmatprep.subr.mxu0 %v4269_v14 }
  0xce   : > { %1227 = vmatpush1.msra.mxu0 %v4270_v15  ;;  %1290 = vmatprep.mubr.f32.mxu0 %v2817_v50  ;;  %v1417_v15 = vld [vmem:[%s4036_s4 + $0xe0] sm:$0xff] }
  0xcf   : > { %1228 = vmatprep.subr.mxu0 %v2432_v36  ;;  %v4306_v36 = vld [vmem:[#allocation60_spill] sm:$0xff] }
  0xd0   : > { %1229 = vmatpush1.msra.mxu0 %v4271_v16  ;;  %v1401_v16 = vld [vmem:[%s4036_s4 + $0x60] sm:$0xff] }
  0xd1   : > { %1230 = vmatprep.subr.mxu0 %v2447_v46  ;;  %v4308_v46 = vld [vmem:[#allocation62_spill] sm:$0xff] }
  0xd2   : > { %1231 = vmatpush1.msra.mxu0 %v4272_v17  ;;  %v1416_v17 = vld [vmem:[%s4036_s4 + $0xd8] sm:$0xff] }
  0xd3   : > { %1232 = vmatprep.subr.mxu0 %v2461_v43  ;;  %v4307_v43 = vld [vmem:[#allocation61_spill] sm:$0xff] }
  0xd4   : > { %1233 = vmatpush1.msra.mxu0 %v4273_v18  ;;  %v1400_v18 = vld [vmem:[%s4036_s4 + $0x58] sm:$0xff] }
  0xd5   : > { %1234 = vmatprep.subr.mxu0 %v4274_v19  ;;  %v1415_v19 = vld [vmem:[%s4036_s4 + $0xd0] sm:$0xff] }
  0xd6   : > { %1235 = vmatpush1.msra.mxu0 %v4275_v21  ;;  %v1399_v21 = vld [vmem:[%s4036_s4 + $0x50] sm:$0xff] }
  0xd7   : > { %1236 = vmatprep.subr.mxu0 %v2485_v30  ;;  %v4310_v30 = vld [vmem:[#allocation64_spill] sm:$0xff] }
  0xd8   : > { %1237 = vmatpush1.msra.mxu0 %v2497_v23  ;;  %v4311_v23 = vld [vmem:[#allocation65_spill] sm:$0xff] }
  0xd9   : > { %1238 = vmatprep.subr.mxu0 %v2503_v31  ;;  %v4309_v31 = vld [vmem:[#allocation63_spill] sm:$0xff] }
  0xda   : > { %1239 = vmatpush1.msra.mxu0 %v4276_v24  ;;  %v1414_v24 = vld [vmem:[%s4036_s4 + $0xc8] sm:$0xff] }
  0xdb   : > { %1240 = vmatprep.subr.mxu0 %v4277_v25  ;;  %v1398_v25 = vld [vmem:[%s4036_s4 + $0x48] sm:$0xff] }
  0xdc   : > { %1241 = vmatpush1.msra.mxu0 %v4278_v26  ;;  %v1413_v26 = vld [vmem:[%s4036_s4 + $0xc0] sm:$0xff] }
  0xdd   : > { %1242 = vmatprep.subr.mxu0 %v4279_v27  ;;  %v1397_v27 = vld [vmem:[%s4036_s4 + $0x40] sm:$0xff] }
  0xde   : > { %1243 = vmatpush1.msra.mxu0 %v4280_v29  ;;  %v1412_v29 = vld [vmem:[%s4036_s4 + $0xb8] sm:$0xff] }
  0xdf   : > { %1244 = vmatprep.subr.mxu0 %v4281_v34  ;;  %v1396_v34 = vld [vmem:[%s4036_s4 + $0x38] sm:$0xff] }
  0xe0   : > { %1245 = vmatpush1.msra.mxu0 %v4282_v35  ;;  %v1411_v35 = vld [vmem:[%s4036_s4 + $0xb0] sm:$0xff] }
  0xe1   : > { %1246 = vmatprep.subr.mxu0 %v4283_v37  ;;  %v1395_v37 = vld [vmem:[%s4036_s4 + $0x30] sm:$0xff] }
  0xe2   : > { %1247 = vmatpush1.msra.mxu0 %v4284_v38  ;;  %v1410_v38 = vld [vmem:[%s4036_s4 + $0xa8] sm:$0xff] }
  0xe3   : > { %1248 = vmatprep.subr.mxu0 %v4285_v41  ;;  %v1394_v41 = vld [vmem:[%s4036_s4 + $0x28] sm:$0xff] }
  0xe4   : > { %1249 = vmatpush1.msra.mxu0 %v4286_v42  ;;  %v1409_v42 = vld [vmem:[%s4036_s4 + $0xa0] sm:$0xff] }
  0xe5   : > { %1250 = vmatprep.subr.mxu0 %v4287_v44  ;;  %v1393_v44 = vld [vmem:[%s4036_s4 + $0x20] sm:$0xff] }
  0xe6   : > { %1251 = vmatpush1.msra.mxu0 %v4288_v45  ;;  %v1408_v45 = vld [vmem:[%s4036_s4 + $0x98] sm:$0xff] }
  0xe7   : > { %1252 = vmatprep.subr.mxu0 %v4289_v47  ;;  %v1392_v47 = vld [vmem:[%s4036_s4 + $0x18] sm:$0xff] }
  0xe8   : > { %1253 = vmatpush1.msra.mxu0 %v4290_v49  ;;  %v1407_v49 = vld [vmem:[%s4036_s4 + $0x90] sm:$0xff] }
  0xe9   : > { %1254 = vmatprep.subr.mxu0 %v4291_v51  ;;  %v1391_v51 = vld [vmem:[%s4036_s4 + $0x10] sm:$0xff] }
  0xea   : > { %1255 = vmatpush1.msra.mxu0 %v4292_v52  ;;  %v1406_v52 = vld [vmem:[%s4036_s4 + $0x88] sm:$0xff] }
  0xeb   : > { %1256 = vmatprep.subr.mxu0 %v4293_v53  ;;  %v1390_v53 = vld [vmem:[%s4036_s4 + $0x8] sm:$0xff] }
  0xec   : > { %1257 = vmatpush1.msra.mxu0 %v4294_v54  ;;  %v1405_v54 = vld [vmem:[%s4036_s4 + $0x80] sm:$0xff] }
  0xed   : > { %1258 = vmatprep.subr.mxu0 %v4295_v55  ;;  %v1389_v55 = vld [vmem:[%s4036_s4] sm:$0xff] }
  0xee   : > { %1259 = vmatpush2.msra.mxu0 %v4296_v56 }
  0xef   : > { %1260 = vmatprep.subr.mxu0 %v4297_v57 }
  0xf0   : > { %1261 = vmatpush2.msra.mxu0 %v4298_v58 }
  0xf1   : > { %1262 = vmatprep.subr.mxu0 %v4299_v59  ;;  %v3071_v59 = vld [vmem:[%s4034_s2 + $0x3d8] sm:$0xff] }
  0xf2   : > { %1263 = vmatpush2.msra.mxu0 %v4300_v60  ;;  %v3076_v60 = vld [vmem:[%s4034_s2 + $0x3d0] sm:$0xff]  ;;  %821 = vmatprep.subr.mxu1 %v3071_v59 }
  0xf3   : > { %1264 = vmatprep.subr.mxu0 %v4301_v61  ;;  %822 = vmatpush1.msra.mxu1 %v3076_v60  ;;  %v3083_v61 = vld [vmem:[%s4034_s2 + $0x398] sm:$0xff] }
  0xf4   : > { %1265 = vmatpush2.msra.mxu0 %v4302_v62  ;;  %v3088_v62 = vld [vmem:[%s4034_s2 + $0x390] sm:$0xff]  ;;  %823 = vmatprep.subr.mxu1 %v3083_v61 }
  0xf5   : > { %1266 = vmatprep.subr.mxu0 %v4303_v63  ;;  %v3093_v63 = vld [vmem:[%s4034_s2 + $0x358] sm:$0xff]  ;;  %824 = vmatpush1.msra.mxu1 %v3088_v62 }
  0xf6   : > { %1267 = vmatpush2.msra.mxu0 %v4304_v20  ;;  %v3099_v20 = vld [vmem:[%s4034_s2 + $0x350] sm:$0xff]  ;;  %825 = vmatprep.subr.mxu1 %v3093_v63 }
  0xf7   : > { %1268 = vmatprep.subr.mxu0 %v4305_v22  ;;  %v3105_v22 = vld [vmem:[%s4034_s2 + $0x318] sm:$0xff]  ;;  %826 = vmatpush1.msra.mxu1 %v3099_v20 }
  0xf8   : > { %1269 = vmatpush2.msra.mxu0 %v4306_v36  ;;  %v3111_v36 = vld [vmem:[%s4034_s2 + $0x310] sm:$0xff]  ;;  %827 = vmatprep.subr.mxu1 %v3105_v22 }
  0xf9   : > { %1270 = vmatprep.subr.mxu0 %v4307_v43  ;;  %v3117_v43 = vld [vmem:[%s4034_s2 + $0x2d8] sm:$0xff]  ;;  %828 = vmatpush1.msra.mxu1 %v3111_v36 }
  0xfa   : > { %1271 = vmatpush2.msra.mxu0 %v4308_v46  ;;  %v3123_v46 = vld [vmem:[%s4034_s2 + $0x2d0] sm:$0xff]  ;;  %829 = vmatprep.subr.mxu1 %v3117_v43 }
  0xfb   : > { %1272 = vmatprep.subr.mxu0 %v4309_v31  ;;  %v3129_v31 = vld [vmem:[%s4034_s2 + $0x298] sm:$0xff]  ;;  %830 = vmatpush1.msra.mxu1 %v3123_v46 }
  0xfc   : > { %1273 = vmatpush2.msra.mxu0 %v4310_v30  ;;  %v3135_v30 = vld [vmem:[%s4034_s2 + $0x290] sm:$0xff]  ;;  %831 = vmatprep.subr.mxu1 %v3129_v31 }
  0xfd   : > { %1274 = vmatprep.subr.mxu0 %v4311_v23  ;;  %v3141_v23 = vld [vmem:[%s4034_s2 + $0x258] sm:$0xff]  ;;  %832 = vmatpush1.msra.mxu1 %v3135_v30 }
  0xfe   : > { %1275 = vmatpush2.msra.mxu0 %v4312_v0  ;;  %v3147_v0 = vld [vmem:[%s4034_s2 + $0x250] sm:$0xff]  ;;  %833 = vmatprep.subr.mxu1 %v3141_v23 }
  0xff   : > { %1276 = vmatprep.subr.mxu0 %v4313_v1  ;;  %v3153_v1 = vld [vmem:[%s4034_s2 + $0x218] sm:$0xff]  ;;  %834 = vmatpush1.msra.mxu1 %v3147_v0 }
 0x100   : > { %1277 = vmatpush2.msra.mxu0 %v4314_v2  ;;  %v3159_v2 = vld [vmem:[%s4034_s2 + $0x210] sm:$0xff]  ;;  %835 = vmatprep.subr.mxu1 %v3153_v1 }
 0x101   : > { %1278 = vmatprep.subr.mxu0 %v4315_v3  ;;  %v3165_v3 = vld [vmem:[%s4034_s2 + $0x1d8] sm:$0xff]  ;;  %836 = vmatpush1.msra.mxu1 %v3159_v2 }
 0x102   : > { %1279 = vmatpush2.msra.mxu0 %v4316_v4  ;;  %v3171_v4 = vld [vmem:[%s4034_s2 + $0x1d0] sm:$0xff]  ;;  %837 = vmatprep.subr.mxu1 %v3165_v3 }
 0x103   : > { %1280 = vmatprep.subr.mxu0 %v4317_v5  ;;  %v3177_v5 = vld [vmem:[%s4034_s2 + $0x198] sm:$0xff]  ;;  %838 = vmatpush1.msra.mxu1 %v3171_v4 }
 0x104   : > { %1281 = vmatpush2.msra.mxu0 %v4318_v6  ;;  %v3183_v6 = vld [vmem:[%s4034_s2 + $0x190] sm:$0xff]  ;;  %839 = vmatprep.subr.mxu1 %v3177_v5 }
 0x105   : > { %1282 = vmatprep.subr.mxu0 %v4319_v7  ;;  %v3189_v7 = vld [vmem:[%s4034_s2 + $0x158] sm:$0xff]  ;;  %840 = vmatpush1.msra.mxu1 %v3183_v6 }
 0x106   : > { %1283 = vmatpush2.msra.mxu0 %v4320_v8  ;;  %v3195_v8 = vld [vmem:[%s4034_s2 + $0x150] sm:$0xff]  ;;  %841 = vmatprep.subr.mxu1 %v3189_v7 }
 0x107   : > { %1284 = vmatprep.subr.mxu0 %v4321_v9  ;;  %v3201_v9 = vld [vmem:[%s4034_s2 + $0x118] sm:$0xff]  ;;  %842 = vmatpush1.msra.mxu1 %v3195_v8 }
 0x108   : > { %1285 = vmatpush2.msra.mxu0 %v2788_v48  ;;  %843 = vmatprep.subr.mxu1 %v3201_v9 }
 0x109   : > { %1286 = vmatprep.subr.mxu0 %v2794_v39  ;;  %v1403_v39 = vld [vmem:[%s4036_s4 + $0x70] sm:$0xff] }
 0x10a   : > { %1287 = vmatpush2.msra.mxu0 %v2800_v33  ;;  %v1419_v33 = vld [vmem:[%s4036_s4 + $0xf0] sm:$0xff] }
 0x10b   : > { %1288 = vmatprep.subr.mxu0 %v2806_v28  ;;  %v1418_v28 = vld [vmem:[%s4036_s4 + $0xe8] sm:$0xff] }
 0x10c   : > { %1289 = vmatpush2.msra.mxu0 %v2812_v40 }
 0x10d   : > { %v816_v48 = vpop.f32.mrf.mxu0  ;;  %1291 = vmatmul.mubr.f32.vlgmr.msra.gmra.mxu0 %v2426_v32  ;;  %1777 = vmatprep.subr.mxu0 %v1420_v11  ;;  %v1402_v32 = vld [vmem:[%s4036_s4 + $0x68] sm:$0xff]  ;;  %v3213_v11 = vld [vmem:[%s4034_s2 + $0xd8] sm:$0xff] }
 0x10e   : > { %1778 = vmatpush3.msra.mxu0 %v1404_v13  ;;  %1503 = vmatprep.mubr.f32.mxu0 %v1436_v12  ;;  %v3219_v12 = vld [vmem:[%s4034_s2 + $0xd0] sm:$0xff]  ;;  %v3225_v13 = vld [vmem:[%s4034_s2 + $0x98] sm:$0xff] }
 0x10f   : > { %v818_v40 = vpop.f32.mrf.mxu0  ;;  %1779 = vmatprep.subr.mxu0 %v1419_v33  ;;  %v3231_v33 = vld [vmem:[%s4034_s2 + $0x90] sm:$0xff] }
 0x110   : > { %v1042_v14 = vcombine.low %v816_v48, %v818_v40  ;;  %1780 = vmatpush3.msra.mxu0 %v1403_v39  ;;  %v3237_v39 = vld [vmem:[%s4034_s2 + $0x58] sm:$0xff] }
 0x111   : > { %1781 = vmatprep.subr.mxu0 %v1418_v28  ;;  %v3243_v28 = vld [vmem:[%s4034_s2 + $0x50] sm:$0xff] }
 0x112   : > { %1050 = vst [vmem:[%s2982_s19] sm:$0x77] %v1042_v14  ;;  %1782 = vmatpush3.msra.mxu0 %v1402_v32  ;;  %v3256_v32 = vld [vmem:[%s4034_s2 + $0x18] sm:$0xff] }
 0x113   : > { %1783 = vmatprep.subr.mxu0 %v1417_v15  ;;  %v3262_v15 = vld [vmem:[%s4034_s2 + $0x10] sm:$0xff] }
 0x114   : > { %1784 = vmatpush3.msra.mxu0 %v1401_v16  ;;  %v3268_v16 = vld [vmem:[%s4034_s2 + $0x7d8] sm:$0xff] }
 0x115   : > { %1785 = vmatprep.subr.mxu0 %v1416_v17  ;;  %v3275_v17 = vld [vmem:[%s4034_s2 + $0x7d0] sm:$0xff] }
 0x116   : > { %1786 = vmatpush3.msra.mxu0 %v1400_v18  ;;  %v3281_v18 = vld [vmem:[%s4034_s2 + $0x798] sm:$0xff] }
 0x117   : > { %1787 = vmatprep.subr.mxu0 %v1415_v19  ;;  %v3287_v19 = vld [vmem:[%s4034_s2 + $0x790] sm:$0xff] }
 0x118   : > { %1788 = vmatpush3.msra.mxu0 %v1399_v21  ;;  %v3293_v21 = vld [vmem:[%s4034_s2 + $0x758] sm:$0xff] }
 0x119   : > { %1789 = vmatprep.subr.mxu0 %v1414_v24  ;;  %v3299_v24 = vld [vmem:[%s4034_s2 + $0x750] sm:$0xff] }
 0x11a   : > { %1790 = vmatpush3.msra.mxu0 %v1398_v25  ;;  %v3305_v25 = vld [vmem:[%s4034_s2 + $0x718] sm:$0xff] }
 0x11b   : > { %1791 = vmatprep.subr.mxu0 %v1413_v26  ;;  %v3311_v26 = vld [vmem:[%s4034_s2 + $0x710] sm:$0xff] }
 0x11c   : > { %1792 = vmatpush3.msra.mxu0 %v1397_v27  ;;  %v3317_v27 = vld [vmem:[%s4034_s2 + $0x6d8] sm:$0xff] }
 0x11d   : > { %1793 = vmatprep.subr.mxu0 %v1412_v29  ;;  %v3323_v29 = vld [vmem:[%s4034_s2 + $0x6d0] sm:$0xff] }
 0x11e   : > { %1794 = vmatpush3.msra.mxu0 %v1396_v34  ;;  %v3329_v34 = vld [vmem:[%s4034_s2 + $0x698] sm:$0xff] }
 0x11f   : > { %1795 = vmatprep.subr.mxu0 %v1411_v35  ;;  %v3335_v35 = vld [vmem:[%s4034_s2 + $0x690] sm:$0xff] }
 0x120   : > { %1796 = vmatpush3.msra.mxu0 %v1395_v37  ;;  %v3341_v37 = vld [vmem:[%s4034_s2 + $0x658] sm:$0xff] }
 0x121   : > { %1797 = vmatprep.subr.mxu0 %v1410_v38  ;;  %v3347_v38 = vld [vmem:[%s4034_s2 + $0x650] sm:$0xff] }
 0x122   : > { %1798 = vmatpush3.msra.mxu0 %v1394_v41  ;;  %v3353_v41 = vld [vmem:[%s4034_s2 + $0x618] sm:$0xff] }
 0x123   : > { %1799 = vmatprep.subr.mxu0 %v1409_v42  ;;  %v3359_v42 = vld [vmem:[%s4034_s2 + $0x610] sm:$0xff] }
 0x124   : > { %1800 = vmatpush3.msra.mxu0 %v1393_v44  ;;  %v3365_v44 = vld [vmem:[%s4034_s2 + $0x5d8] sm:$0xff] }
 0x125   : > { %1801 = vmatprep.subr.mxu0 %v1408_v45  ;;  %v3371_v45 = vld [vmem:[%s4034_s2 + $0x5d0] sm:$0xff] }
 0x126   : > { %1802 = vmatpush3.msra.mxu0 %v1392_v47  ;;  %v3377_v47 = vld [vmem:[%s4034_s2 + $0x598] sm:$0xff] }
 0x127   : > { %1803 = vmatprep.subr.mxu0 %v1407_v49  ;;  %v3383_v49 = vld [vmem:[%s4034_s2 + $0x590] sm:$0xff] }
 0x128   : > { %1804 = vmatpush3.msra.mxu0 %v1391_v51  ;;  %v3389_v51 = vld [vmem:[%s4034_s2 + $0x558] sm:$0xff] }
 0x129   : > { %1805 = vmatprep.subr.mxu0 %v1406_v52  ;;  %4322 = vst [vmem:[#allocation9_spill] sm:$0xff] %v3389_v51  ;;  %v3395_v52 = vld [vmem:[%s4034_s2 + $0x550] sm:$0xff] }
 0x12a   : > { %1806 = vmatpush3.msra.mxu0 %v1390_v53  ;;  %4323 = vst [vmem:[#allocation10_spill] sm:$0xff] %v3395_v52  ;;  %v3401_v53 = vld [vmem:[%s4034_s2 + $0x518] sm:$0xff] }
 0x12b   : > { %1807 = vmatprep.subr.mxu0 %v1405_v54  ;;  %4324 = vst [vmem:[#allocation11_spill] sm:$0xff] %v3401_v53  ;;  %v3407_v54 = vld [vmem:[%s4034_s2 + $0x510] sm:$0xff] }
 0x12c   : > { %1808 = vmatpush3.msra.mxu0 %v1389_v55  ;;  %4325 = vst [vmem:[#allocation12_spill] sm:$0xff] %v3407_v54  ;;  %v3413_v55 = vld [vmem:[%s4034_s2 + $0x4d8] sm:$0xff] }
 0x12d   : > { %1504 = vmatmul.mubr.f32.vlgmr.msra.gmra.mxu0 %v2951_v10  ;;  %v3207_v10 = vld [vmem:[%s4034_s2 + $0x110] sm:$0xff]  ;;  %4326 = vst [vmem:[#allocation13_spill] sm:$0xff] %v3413_v55 }
 0x12e   : > { %844 = vmatpush1.msra.mxu1 %v3207_v10 }
 0x12f   : > { %845 = vmatprep.subr.mxu1 %v3213_v11 }
 0x130   : > { %846 = vmatpush1.msra.mxu1 %v3219_v12 }
 0x131   : > { %847 = vmatprep.subr.mxu1 %v3225_v13 }
 0x132   : > { %848 = vmatpush1.msra.mxu1 %v3231_v33 }
 0x133   : > { %849 = vmatprep.subr.mxu1 %v3237_v39 }
 0x134   : > { %850 = vmatpush1.msra.mxu1 %v3243_v28 }
 0x135   : > { %851 = vmatprep.subr.mxu1 %v3256_v32 }
 0x136   : > { %852 = vmatpush1.msra.mxu1 %v3262_v15 }
 0x137   : > { %853 = vmatprep.subr.mxu1 %v3268_v16 }
 0x138   : > { %854 = vmatpush2.msra.mxu1 %v3275_v17 }
 0x139   : > { %855 = vmatprep.subr.mxu1 %v3281_v18 }
 0x13a   : > { %856 = vmatpush2.msra.mxu1 %v3287_v19 }
 0x13b   : > { %857 = vmatprep.subr.mxu1 %v3293_v21 }
 0x13c   : > { %858 = vmatpush2.msra.mxu1 %v3299_v24 }
 0x13d   : > { %859 = vmatprep.subr.mxu1 %v3305_v25 }
 0x13e   : > { %860 = vmatpush2.msra.mxu1 %v3311_v26 }
 0x13f   : > { %861 = vmatprep.subr.mxu1 %v3317_v27 }
 0x140   : > { %862 = vmatpush2.msra.mxu1 %v3323_v29 }
 0x141   : > { %863 = vmatprep.subr.mxu1 %v3329_v34 }
 0x142   : > { %864 = vmatpush2.msra.mxu1 %v3335_v35 }
 0x143   : > { %865 = vmatprep.subr.mxu1 %v3341_v37 }
 0x144   : > { %866 = vmatpush2.msra.mxu1 %v3347_v38 }
 0x145   : > { %867 = vmatprep.subr.mxu1 %v3353_v41 }
 0x146   : > { %868 = vmatpush2.msra.mxu1 %v3359_v42 }
 0x147   : > { %869 = vmatprep.subr.mxu1 %v3365_v44 }
 0x148   : > { %870 = vmatpush2.msra.mxu1 %v3371_v45 }
 0x149   : > { %871 = vmatprep.subr.mxu1 %v3377_v47 }
 0x14a   : > { %872 = vmatpush2.msra.mxu1 %v3383_v49 }
 0x14b   : > { %873 = vmatprep.subr.mxu1 %v3389_v51 }
 0x14c   : > { %874 = vmatpush2.msra.mxu1 %v3395_v52  ;;  %v3658_v52 = vld [vmem:[%s4034_s2 + $0x7f8] sm:$0xff] }
 0x14d   : > { %v958_v56 = vpop.f32.mrf.mxu0  ;;  %875 = vmatprep.subr.mxu1 %v3401_v53  ;;  %v3646_v53 = vld [vmem:[%s4034_s2 + $0x38] sm:$0xff]  ;;  %4367 = vst [vmem:[#allocation53_spill] sm:$0xff] %v3658_v52 }
 0x14e   : > { %876 = vmatpush2.msra.mxu1 %v3407_v54  ;;  %v3640_v54 = vld [vmem:[%s4034_s2 + $0x70] sm:$0xff]  ;;  %4365 = vst [vmem:[#allocation51_spill] sm:$0xff] %v3646_v53 }
 0x14f   : > { %v960_v57 = vpop.f32.mrf.mxu0  ;;  %877 = vmatprep.subr.mxu1 %v3413_v55  ;;  %v4339_v55 = vld [vmem:[#allocation8_spill] sm:$0xff]  ;;  %4364 = vst [vmem:[#allocation50_spill] sm:$0xff] %v3640_v54 }
 0x150   : > { %v1044_v58 = vcombine.low %v958_v56, %v960_v57  ;;  %v3419_v56 = vld [vmem:[%s4034_s2 + $0x4d0] sm:$0xff]  ;;  %v3425_v57 = vld [vmem:[%s4034_s2 + $0x498] sm:$0xff] }
 0x151   : > { %4327 = vst [vmem:[#allocation14_spill] sm:$0xff] %v3419_v56  ;;  %4328 = vst [vmem:[#allocation15_spill] sm:$0xff] %v3425_v57  ;;  %878 = vmatpush2.msra.mxu1 %v3419_v56  ;;  %v3455_v56 = vld [vmem:[%s4034_s2 + $0x410] sm:$0xff] }
 0x152   : > { %1052 = vst [vmem:[%s2982_s19 + $0x10] sm:$0x77] %v1044_v58  ;;  %v3431_v58 = vld [vmem:[%s4034_s2 + $0x490] sm:$0xff]  ;;  %879 = vmatprep.subr.mxu1 %v3425_v57  ;;  %4333 = vst [vmem:[#allocation20_spill] sm:$0xff] %v3455_v56  ;;  %v3461_v57 = vld [vmem:[%s4034_s2 + $0x3f8] sm:$0xff] }
 0x153   : > { %4329 = vst [vmem:[#allocation16_spill] sm:$0xff] %v3431_v58  ;;  %880 = vmatpush2.msra.mxu1 %v3431_v58  ;;  %4334 = vst [vmem:[#allocation21_spill] sm:$0xff] %v3461_v57  ;;  %v3467_v58 = vld [vmem:[%s4034_s2 + $0x3f0] sm:$0xff] }
 0x154   : > { %4335 = vst [vmem:[#allocation22_spill] sm:$0xff] %v3467_v58 }
 0x18d   : > { %v1150_v48 = vpop.f32.mrf.mxu0 }
 0x18f   : > { %v1152_v40 = vpop.f32.mrf.mxu0 }
 0x190   : > { %v1376_v14 = vcombine.low %v1150_v48, %v1152_v40  ;;  %v3437_v48 = vld [vmem:[%s4034_s2 + $0x458] sm:$0xff]  ;;  %v3443_v40 = vld [vmem:[%s4034_s2 + $0x450] sm:$0xff] }
 0x191   : > { %4330 = vst [vmem:[#allocation17_spill] sm:$0xff] %v3437_v48  ;;  %4331 = vst [vmem:[#allocation18_spill] sm:$0xff] %v3443_v40  ;;  %881 = vmatprep.subr.mxu1 %v3437_v48  ;;  %v3473_v48 = vld [vmem:[%s4034_s2 + $0x3b8] sm:$0xff] }
 0x192   : > { %1384 = vst [vmem:[%s3250_s15] sm:$0x77] %v1376_v14  ;;  %v3449_v14 = vld [vmem:[%s4034_s2 + $0x418] sm:$0xff]  ;;  %882 = vmatpush2.msra.mxu1 %v3443_v40  ;;  %4336 = vst [vmem:[#allocation23_spill] sm:$0xff] %v3473_v48  ;;  %v3477_v40 = vld [vmem:[%s2118_s20] sm:$0x77] }
 0x193   : > { %4332 = vst [vmem:[#allocation19_spill] sm:$0xff] %v3449_v14  ;;  %883 = vmatprep.subr.mxu1 %v3449_v14  ;;  %v3483_v14 = vld [vmem:[%s4034_s2 + $0x3b0] sm:$0xff] }
 0x194   : > { %884 = vmatpush2.msra.mxu1 %v3455_v56  ;;  %4337 = vst [vmem:[#allocation24_spill] sm:$0xff] %v3483_v14  ;;  %v3489_v56 = vld [vmem:[%s4034_s2 + $0x378] sm:$0xff] }
 0x195   : > { %963 = vmatprep.subr.mxu1 %v3461_v57  ;;  %886 = vmatmul.mubr.f32.vlgmr.msra.gmra.mxu1 %v3477_v40  ;;  %4338 = vst [vmem:[#allocation25_spill] sm:$0xff] %v3489_v56  ;;  %v3496_v57 = vld [vmem:[%s4034_s2 + $0x370] sm:$0xff] }
 0x196   : > { %964 = vmatpush1.msra.mxu1 %v3467_v58  ;;  %1027 = vmatprep.mubr.f32.mxu1 %v4339_v55  ;;  %4340 = vst [vmem:[#allocation26_spill] sm:$0xff] %v3496_v57  ;;  %v3502_v58 = vld [vmem:[%s4034_s2 + $0x338] sm:$0xff]  ;;  %v3508_v55 = vld [vmem:[%s4034_s2 + $0x330] sm:$0xff] }
 0x197   : > { %965 = vmatprep.subr.mxu1 %v3473_v48  ;;  %4341 = vst [vmem:[#allocation27_spill] sm:$0xff] %v3502_v58  ;;  %4342 = vst [vmem:[#allocation28_spill] sm:$0xff] %v3508_v55  ;;  %v3514_v48 = vld [vmem:[%s4034_s2 + $0x2f8] sm:$0xff] }
 0x198   : > { %966 = vmatpush1.msra.mxu1 %v3483_v14  ;;  %4343 = vst [vmem:[#allocation29_spill] sm:$0xff] %v3514_v48  ;;  %v3520_v14 = vld [vmem:[%s4034_s2 + $0x2f0] sm:$0xff] }
 0x199   : > { %967 = vmatprep.subr.mxu1 %v3489_v56  ;;  %4344 = vst [vmem:[#allocation30_spill] sm:$0xff] %v3520_v14  ;;  %v3526_v56 = vld [vmem:[%s4034_s2 + $0x2b8] sm:$0xff] }
 0x19a   : > { %968 = vmatpush1.msra.mxu1 %v3496_v57  ;;  %4345 = vst [vmem:[#allocation31_spill] sm:$0xff] %v3526_v56  ;;  %v3532_v57 = vld [vmem:[%s4034_s2 + $0x2b0] sm:$0xff] }
 0x19b   : > { %969 = vmatprep.subr.mxu1 %v3502_v58  ;;  %4346 = vst [vmem:[#allocation32_spill] sm:$0xff] %v3532_v57  ;;  %v3538_v58 = vld [vmem:[%s4034_s2 + $0x278] sm:$0xff] }
 0x19c   : > { %970 = vmatpush1.msra.mxu1 %v3508_v55  ;;  %4347 = vst [vmem:[#allocation33_spill] sm:$0xff] %v3538_v58  ;;  %v3544_v55 = vld [vmem:[%s4034_s2 + $0x270] sm:$0xff] }
 0x19d   : > { %971 = vmatprep.subr.mxu1 %v3514_v48  ;;  %4348 = vst [vmem:[#allocation34_spill] sm:$0xff] %v3544_v55  ;;  %v3550_v48 = vld [vmem:[%s4034_s2 + $0x238] sm:$0xff] }
 0x19e   : > { %972 = vmatpush1.msra.mxu1 %v3520_v14  ;;  %4349 = vst [vmem:[#allocation35_spill] sm:$0xff] %v3550_v48  ;;  %v3556_v14 = vld [vmem:[%s4034_s2 + $0x230] sm:$0xff] }
 0x19f   : > { %973 = vmatprep.subr.mxu1 %v3526_v56  ;;  %4350 = vst [vmem:[#allocation36_spill] sm:$0xff] %v3556_v14  ;;  %v3562_v56 = vld [vmem:[%s4034_s2 + $0x1f8] sm:$0xff] }
 0x1a0   : > { %974 = vmatpush1.msra.mxu1 %v3532_v57  ;;  %4351 = vst [vmem:[#allocation37_spill] sm:$0xff] %v3562_v56  ;;  %v3568_v57 = vld [vmem:[%s4034_s2 + $0x1f0] sm:$0xff] }
 0x1a1   : > { %975 = vmatprep.subr.mxu1 %v3538_v58  ;;  %4352 = vst [vmem:[#allocation38_spill] sm:$0xff] %v3568_v57  ;;  %v3574_v58 = vld [vmem:[%s4034_s2 + $0x1b8] sm:$0xff] }
 0x1a2   : > { %976 = vmatpush1.msra.mxu1 %v3544_v55  ;;  %4353 = vst [vmem:[#allocation39_spill] sm:$0xff] %v3574_v58  ;;  %v3580_v55 = vld [vmem:[%s4034_s2 + $0x1b0] sm:$0xff] }
 0x1a3   : > { %977 = vmatprep.subr.mxu1 %v3550_v48  ;;  %4354 = vst [vmem:[#allocation40_spill] sm:$0xff] %v3580_v55  ;;  %v3586_v48 = vld [vmem:[%s4034_s2 + $0x178] sm:$0xff] }
 0x1a4   : > { %978 = vmatpush1.msra.mxu1 %v3556_v14  ;;  %4355 = vst [vmem:[#allocation41_spill] sm:$0xff] %v3586_v48  ;;  %v3592_v14 = vld [vmem:[%s4034_s2 + $0x170] sm:$0xff] }
 0x1a5   : > { %979 = vmatprep.subr.mxu1 %v3562_v56  ;;  %4356 = vst [vmem:[#allocation42_spill] sm:$0xff] %v3592_v14  ;;  %v3598_v56 = vld [vmem:[%s4034_s2 + $0x138] sm:$0xff] }
 0x1a6   : > { %980 = vmatpush1.msra.mxu1 %v3568_v57  ;;  %4357 = vst [vmem:[#allocation43_spill] sm:$0xff] %v3598_v56  ;;  %v3604_v57 = vld [vmem:[%s4034_s2 + $0x130] sm:$0xff] }
 0x1a7   : > { %981 = vmatprep.subr.mxu1 %v3574_v58  ;;  %4358 = vst [vmem:[#allocation44_spill] sm:$0xff] %v3604_v57  ;;  %v3610_v58 = vld [vmem:[%s4034_s2 + $0xf8] sm:$0xff] }
 0x1a8   : > { %982 = vmatpush1.msra.mxu1 %v3580_v55  ;;  %4359 = vst [vmem:[#allocation45_spill] sm:$0xff] %v3610_v58  ;;  %v3616_v55 = vld [vmem:[%s4034_s2 + $0xf0] sm:$0xff] }
 0x1a9   : > { %983 = vmatprep.subr.mxu1 %v3586_v48  ;;  %4360 = vst [vmem:[#allocation46_spill] sm:$0xff] %v3616_v55  ;;  %v3622_v48 = vld [vmem:[%s4034_s2 + $0xb8] sm:$0xff] }
 0x1aa   : > { %984 = vmatpush1.msra.mxu1 %v3592_v14  ;;  %4361 = vst [vmem:[#allocation47_spill] sm:$0xff] %v3622_v48  ;;  %v3628_v14 = vld [vmem:[%s4034_s2 + $0xb0] sm:$0xff] }
 0x1ab   : > { %985 = vmatprep.subr.mxu1 %v3598_v56  ;;  %4362 = vst [vmem:[#allocation48_spill] sm:$0xff] %v3628_v14 }
 0x1ac   : > { %986 = vmatpush1.msra.mxu1 %v3604_v57  ;;  %v3634_v57 = vld [vmem:[%s4034_s2 + $0x78] sm:$0xff] }
 0x1ad   : > { %987 = vmatprep.subr.mxu1 %v3610_v58  ;;  %4363 = vst [vmem:[#allocation49_spill] sm:$0xff] %v3634_v57 }
 0x1ae   : > { %988 = vmatpush1.msra.mxu1 %v3616_v55 }
 0x1af   : > { %989 = vmatprep.subr.mxu1 %v3622_v48  ;;  %v3652_v48 = vld [vmem:[%s4034_s2 + $0x30] sm:$0xff] }
 0x1b0   : > { %990 = vmatpush1.msra.mxu1 %v3628_v14  ;;  %4366 = vst [vmem:[#allocation52_spill] sm:$0xff] %v3652_v48 }
 0x1b1   : > { %991 = vmatprep.subr.mxu1 %v3634_v57 }
 0x1b2   : > { %992 = vmatpush1.msra.mxu1 %v3640_v54  ;;  %v3827_v54 = vld [vmem:[%s4034_s2 + $0x478] sm:$0xff] }
 0x1b3   : > { %993 = vmatprep.subr.mxu1 %v3646_v53  ;;  %v3683_v53 = vld [vmem:[%s4034_s2 + $0x778] sm:$0xff] }
 0x1b4   : > { %994 = vmatpush1.msra.mxu1 %v3652_v48  ;;  %4371 = vst [vmem:[#allocation57_spill] sm:$0xff] %v3683_v53  ;;  %v3689_v48 = vld [vmem:[%s4034_s2 + $0x770] sm:$0xff] }
 0x1b5   : > { %995 = vmatprep.subr.mxu1 %v3658_v52  ;;  %4372 = vst [vmem:[#allocation58_spill] sm:$0xff] %v3689_v48  ;;  %v3695_v52 = vld [vmem:[%s4034_s2 + $0x738] sm:$0xff] }
 0x1b6   : > { %4373 = vst [vmem:[#allocation59_spill] sm:$0xff] %v3695_v52 }
 0x1cd   : > { %v1292_v56 = vpop.f32.mrf.mxu0 }
 0x1cf   : > { %v1294_v58 = vpop.f32.mrf.mxu0 }
 0x1d0   : > { %v1378_v55 = vcombine.low %v1292_v56, %v1294_v58  ;;  %v3665_v56 = vld [vmem:[%s4034_s2 + $0x7f0] sm:$0xff]  ;;  %v3671_v58 = vld [vmem:[%s4034_s2 + $0x7b8] sm:$0xff] }
 0x1d1   : > { %4368 = vst [vmem:[#allocation54_spill] sm:$0xff] %v3665_v56  ;;  %4369 = vst [vmem:[#allocation55_spill] sm:$0xff] %v3671_v58  ;;  %996 = vmatpush2.msra.mxu1 %v3665_v56  ;;  %v3701_v56 = vld [vmem:[%s4034_s2 + $0x730] sm:$0xff] }
 0x1d2   : > { %1386 = vst [vmem:[%s3250_s15 + $0x10] sm:$0x77] %v1378_v55  ;;  %v3677_v55 = vld [vmem:[%s4034_s2 + $0x7b0] sm:$0xff]  ;;  %997 = vmatprep.subr.mxu1 %v3671_v58  ;;  %4374 = vst [vmem:[#allocation60_spill] sm:$0xff] %v3701_v56  ;;  %v3707_v58 = vld [vmem:[%s4034_s2 + $0x6f8] sm:$0xff] }
 0x1d3   : > { %4370 = vst [vmem:[#allocation56_spill] sm:$0xff] %v3677_v55  ;;  %998 = vmatpush2.msra.mxu1 %v3677_v55  ;;  %4375 = vst [vmem:[#allocation61_spill] sm:$0xff] %v3707_v58  ;;  %v3713_v55 = vld [vmem:[%s4034_s2 + $0x6f0] sm:$0xff] }
 0x1d4   : > { %999 = vmatprep.subr.mxu1 %v3683_v53  ;;  %4376 = vst [vmem:[#allocation62_spill] sm:$0xff] %v3713_v55  ;;  %v3719_v53 = vld [vmem:[%s4034_s2 + $0x6b8] sm:$0xff] }
 0x1d5   : > { %1000 = vmatpush2.msra.mxu1 %v3689_v48  ;;  %4377 = vst [vmem:[#allocation63_spill] sm:$0xff] %v3719_v53  ;;  %v3725_v48 = vld [vmem:[%s4034_s2 + $0x6b0] sm:$0xff] }
 0x1d6   : > { %1001 = vmatprep.subr.mxu1 %v3695_v52  ;;  %4378 = vst [vmem:[#allocation64_spill] sm:$0xff] %v3725_v48  ;;  %v3731_v52 = vld [vmem:[%s4034_s2 + $0x678] sm:$0xff] }
 0x1d7   : > { %1002 = vmatpush2.msra.mxu1 %v3701_v56  ;;  %4379 = vst [vmem:[#allocation65_spill] sm:$0xff] %v3731_v52  ;;  %v3737_v56 = vld [vmem:[%s4034_s2 + $0x670] sm:$0xff] }
 0x1d8   : > { %1003 = vmatprep.subr.mxu1 %v3707_v58  ;;  %4380 = vst [vmem:[#allocation66_spill] sm:$0xff] %v3737_v56  ;;  %v3743_v58 = vld [vmem:[%s4034_s2 + $0x638] sm:$0xff] }
 0x1d9   : > { %1004 = vmatpush2.msra.mxu1 %v3713_v55  ;;  %4381 = vst [vmem:[#allocation67_spill] sm:$0xff] %v3743_v58  ;;  %v3749_v55 = vld [vmem:[%s4034_s2 + $0x630] sm:$0xff] }
 0x1da   : > { %1005 = vmatprep.subr.mxu1 %v3719_v53  ;;  %4382 = vst [vmem:[#allocation68_spill] sm:$0xff] %v3749_v55  ;;  %v3755_v53 = vld [vmem:[%s4034_s2 + $0x5f8] sm:$0xff] }
 0x1db   : > { %1006 = vmatpush2.msra.mxu1 %v3725_v48  ;;  %4383 = vst [vmem:[#allocation69_spill] sm:$0xff] %v3755_v53  ;;  %v3761_v48 = vld [vmem:[%s4034_s2 + $0x5f0] sm:$0xff] }
 0x1dc   : > { %1007 = vmatprep.subr.mxu1 %v3731_v52  ;;  %4384 = vst [vmem:[#allocation70_spill] sm:$0xff] %v3761_v48  ;;  %v3767_v52 = vld [vmem:[%s4034_s2 + $0x5b8] sm:$0xff] }
 0x1dd   : > { %1008 = vmatpush2.msra.mxu1 %v3737_v56  ;;  %4385 = vst [vmem:[#allocation71_spill] sm:$0xff] %v3767_v52  ;;  %v3773_v56 = vld [vmem:[%s4034_s2 + $0x5b0] sm:$0xff] }
 0x1de   : > { %1009 = vmatprep.subr.mxu1 %v3743_v58  ;;  %4386 = vst [vmem:[#allocation72_spill] sm:$0xff] %v3773_v56  ;;  %v3779_v58 = vld [vmem:[%s4034_s2 + $0x578] sm:$0xff] }
 0x1df   : > { %1010 = vmatpush2.msra.mxu1 %v3749_v55  ;;  %4387 = vst [vmem:[#allocation73_spill] sm:$0xff] %v3779_v58  ;;  %v3785_v55 = vld [vmem:[%s4034_s2 + $0x570] sm:$0xff] }
 0x1e0   : > { %1011 = vmatprep.subr.mxu1 %v3755_v53  ;;  %4388 = vst [vmem:[#allocation74_spill] sm:$0xff] %v3785_v55  ;;  %v3791_v53 = vld [vmem:[%s4034_s2 + $0x538] sm:$0xff] }
 0x1e1   : > { %1012 = vmatpush2.msra.mxu1 %v3761_v48  ;;  %4389 = vst [vmem:[#allocation75_spill] sm:$0xff] %v3791_v53  ;;  %v3797_v48 = vld [vmem:[%s4034_s2 + $0x530] sm:$0xff] }
 0x1e2   : > { %1013 = vmatprep.subr.mxu1 %v3767_v52  ;;  %4390 = vst [vmem:[#allocation8_spill] sm:$0xff] %v3797_v48  ;;  %v3803_v52 = vld [vmem:[%s4034_s2 + $0x4f8] sm:$0xff] }
 0x1e3   : > { %1014 = vmatpush2.msra.mxu1 %v3773_v56  ;;  %4391 = vst [vmem:[#allocation76_spill] sm:$0xff] %v3803_v52  ;;  %v3809_v56 = vld [vmem:[%s4034_s2 + $0x4f0] sm:$0xff] }
 0x1e4   : > { %1015 = vmatprep.subr.mxu1 %v3779_v58  ;;  %4392 = vst [vmem:[#allocation77_spill] sm:$0xff] %v3809_v56  ;;  %v3815_v58 = vld [vmem:[%s4034_s2 + $0x4b8] sm:$0xff] }
 0x1e5   : > { %1016 = vmatpush2.msra.mxu1 %v3785_v55  ;;  %4393 = vst [vmem:[#allocation78_spill] sm:$0xff] %v3815_v58  ;;  %v3821_v55 = vld [vmem:[%s4034_s2 + $0x4b0] sm:$0xff] }
 0x1e6   : > { %1017 = vmatprep.subr.mxu1 %v3791_v53  ;;  %4394 = vst [vmem:[#allocation79_spill] sm:$0xff] %v3821_v55 }
 0x1e7   : > { %1018 = vmatpush2.msra.mxu1 %v3797_v48  ;;  %v3833_v48 = vld [vmem:[%s4034_s2 + $0x470] sm:$0xff] }
 0x1e8   : > { %1019 = vmatprep.subr.mxu1 %v3803_v52  ;;  %v1765_v52 = vld [vmem:[%s4037_s5] ss:$0 sm:$0xff] }
 0x1e9   : > { %1020 = vmatpush2.msra.mxu1 %v3809_v56  ;;  %v3842_v56 = vld [vmem:[%s4034_s2 + $0x438] sm:$0xff] }
 0x1ea   : > { %1021 = vmatprep.subr.mxu1 %v3815_v58  ;;  %v3848_v58 = vld [vmem:[%s4034_s2 + $0x430] sm:$0xff] }
 0x1eb   : > { %1022 = vmatpush2.msra.mxu1 %v3821_v55 }
 0x1ec   : > { %1023 = vmatprep.subr.mxu1 %v3827_v54 }
 0x1ed   : > { %v1809_v53 = vpop.f32.mrf.mxu0  ;;  %1024 = vmatpush2.msra.mxu1 %v3833_v48 }
 0x1ee   : > { %1025 = vmatprep.subr.mxu1 %v3842_v56 }
 0x1ef   : > { %v1810_v57 = vpop.f32.mrf.mxu0  ;;  %1026 = vmatpush2.msra.mxu1 %v3848_v58 }
 0x1f0   : > { %v1811_v14 = vadd.f32 %v1810_v57, %v1809_v53  ;;  %1155 = vmatprep.subr.mxu1 %v3071_v59  ;;  %1028 = vmatmul.mubr.f32.vlgmr.msra.gmra.mxu1 %v3477_v40  ;;  %v4395_v59 = vld [vmem:[#allocation9_spill] sm:$0xff]  ;;  %v4448_v53 = vld [vmem:[#allocation62_spill] sm:$0xff]  ;;  %v4449_v57 = vld [vmem:[#allocation63_spill] sm:$0xff] }
 0x1f1   : > { %1156 = vmatpush1.msra.mxu1 %v3076_v60  ;;  %1219 = vmatprep.mubr.f32.mxu1 %v2817_v50  ;;  %v4396_v60 = vld [vmem:[#allocation10_spill] sm:$0xff]  ;;  %v4450_v40 = vld [vmem:[#allocation64_spill] sm:$0xff] }
 0x1f2   : > { %v3851_v51 = vadd.f32 %v1811_v14, %v1765_v52  ;;  %1157 = vmatprep.subr.mxu1 %v3083_v61  ;;  %v4397_v61 = vld [vmem:[#allocation11_spill] sm:$0xff]  ;;  %v4447_v52 = vld [vmem:[#allocation61_spill] sm:$0xff] }
 0x1f3   : > { %1158 = vmatpush1.msra.mxu1 %v3088_v62  ;;  %v4398_v62 = vld [vmem:[#allocation12_spill] sm:$0xff]  ;;  %v4451_v14 = vld [vmem:[#allocation65_spill] sm:$0xff] }
 0x1f4   : > { %v1511_v55 = vsel %vm1509_vm1, %v3851_v51, -inf  ;;  %1510 = vst.msk [vmem:[#allocation2] sm:$0x3] %vm1509_vm1, %v3851_v51  ;;  %1159 = vmatprep.subr.mxu1 %v3093_v63  ;;  %v4399_v63 = vld [vmem:[#allocation13_spill] sm:$0xff] }
 0x1f5   : > { %1512 = vmax.xlane.f32.xlu0 %v1511_v55  ;;  %1160 = vmatpush1.msra.mxu1 %v3099_v20  ;;  %v4400_v20 = vld [vmem:[#allocation14_spill] sm:$0xff] }
 0x1f6   : > { %1161 = vmatprep.subr.mxu1 %v3105_v22  ;;  %v4401_v22 = vld [vmem:[#allocation15_spill] sm:$0xff]  ;;  %v4452_v55 = vld [vmem:[#allocation66_spill] sm:$0xff] }
 0x1f7   : > { %1162 = vmatpush1.msra.mxu1 %v3111_v36  ;;  %v4402_v36 = vld [vmem:[#allocation16_spill] sm:$0xff] }
 0x1f8   : > { %1163 = vmatprep.subr.mxu1 %v3117_v43  ;;  %v4403_v43 = vld [vmem:[#allocation17_spill] sm:$0xff] }
 0x1f9   : > { %1164 = vmatpush1.msra.mxu1 %v3123_v46  ;;  %v4404_v46 = vld [vmem:[#allocation18_spill] sm:$0xff] }
 0x1fa   : > { %1165 = vmatprep.subr.mxu1 %v3129_v31  ;;  %v4405_v31 = vld [vmem:[#allocation19_spill] sm:$0xff] }
 0x1fb   : > { %1166 = vmatpush1.msra.mxu1 %v3135_v30  ;;  %v4406_v30 = vld [vmem:[#allocation20_spill] sm:$0xff] }
 0x1fc   : > { %1167 = vmatprep.subr.mxu1 %v3141_v23  ;;  %v4407_v23 = vld [vmem:[#allocation21_spill] sm:$0xff] }
 0x1fd   : > { %1168 = vmatpush1.msra.mxu1 %v3147_v0  ;;  %v3927_v0 = vld [vmem:[%s2405_s26] sm:$0x77]  ;;  %s1908_s26 = smov [#allocation2]  }
 0x1fe   : > { %1169 = vmatprep.subr.mxu1 %v3153_v1  ;;  %v4408_v1 = vld [vmem:[#allocation22_spill] sm:$0xff] }
 0x1ff   : > { %1170 = vmatpush1.msra.mxu1 %v3159_v2  ;;  %v4409_v2 = vld [vmem:[#allocation23_spill] sm:$0xff] }
 0x200   : > { %1171 = vmatprep.subr.mxu1 %v3165_v3  ;;  %v4410_v3 = vld [vmem:[#allocation24_spill] sm:$0xff] }
 0x201   : > { %1172 = vmatpush1.msra.mxu1 %v3171_v4  ;;  %v4411_v4 = vld [vmem:[#allocation25_spill] sm:$0xff] }
 0x202   : > { %1173 = vmatprep.subr.mxu1 %v3177_v5  ;;  %v4412_v5 = vld [vmem:[#allocation26_spill] sm:$0xff] }
 0x203   : > { %1174 = vmatpush1.msra.mxu1 %v3183_v6  ;;  %v4413_v6 = vld [vmem:[#allocation27_spill] sm:$0xff] }
 0x204   : > { %1175 = vmatprep.subr.mxu1 %v3189_v7  ;;  %v4414_v7 = vld [vmem:[#allocation28_spill] sm:$0xff] }
 0x205   : > { %1176 = vmatpush1.msra.mxu1 %v3195_v8  ;;  %v4415_v8 = vld [vmem:[#allocation29_spill] sm:$0xff] }
 0x206   : > { %1177 = vmatprep.subr.mxu1 %v3201_v9  ;;  %v4416_v9 = vld [vmem:[#allocation30_spill] sm:$0xff] }
 0x207   : > { %1178 = vmatpush1.msra.mxu1 %v3207_v10  ;;  %v4417_v10 = vld [vmem:[#allocation31_spill] sm:$0xff] }
 0x208   : > { %1179 = vmatprep.subr.mxu1 %v3213_v11  ;;  %v4418_v11 = vld [vmem:[#allocation32_spill] sm:$0xff] }
 0x209   : > { %1180 = vmatpush1.msra.mxu1 %v3219_v12  ;;  %v4420_v12 = vld [vmem:[#allocation34_spill] sm:$0xff] }
 0x20a   : > { %1181 = vmatprep.subr.mxu1 %v3225_v13  ;;  %v4421_v13 = vld [vmem:[#allocation35_spill] sm:$0xff] }
 0x20b   : > { %1182 = vmatpush1.msra.mxu1 %v3231_v33  ;;  %v4422_v33 = vld [vmem:[#allocation36_spill] sm:$0xff] }
 0x20c   : > { %1183 = vmatprep.subr.mxu1 %v3237_v39  ;;  %v4423_v39 = vld [vmem:[#allocation37_spill] sm:$0xff] }
 0x20d   : > { %1184 = vmatpush1.msra.mxu1 %v3243_v28  ;;  %v4424_v28 = vld [vmem:[#allocation38_spill] sm:$0xff] }
 0x20e   : > { %1185 = vmatprep.subr.mxu1 %v3256_v32  ;;  %v4425_v32 = vld [vmem:[#allocation39_spill] sm:$0xff] }
 0x20f   : > { %1186 = vmatpush1.msra.mxu1 %v3262_v15  ;;  %v4426_v15 = vld [vmem:[#allocation40_spill] sm:$0xff] }
 0x210   : > { %1187 = vmatprep.subr.mxu1 %v3268_v16  ;;  %v4427_v16 = vld [vmem:[#allocation41_spill] sm:$0xff] }
 0x211   : > { %1188 = vmatpush2.msra.mxu1 %v3275_v17  ;;  %v4428_v17 = vld [vmem:[#allocation42_spill] sm:$0xff] }
 0x212   : > { %1189 = vmatprep.subr.mxu1 %v3281_v18  ;;  %v4429_v18 = vld [vmem:[#allocation43_spill] sm:$0xff] }
 0x213   : > { %1190 = vmatpush2.msra.mxu1 %v3287_v19  ;;  %v4430_v19 = vld [vmem:[#allocation44_spill] sm:$0xff] }
 0x214   : > { %1191 = vmatprep.subr.mxu1 %v3293_v21  ;;  %v4431_v21 = vld [vmem:[#allocation45_spill] sm:$0xff] }
 0x215   : > { %1192 = vmatpush2.msra.mxu1 %v3299_v24  ;;  %v4432_v24 = vld [vmem:[#allocation46_spill] sm:$0xff] }
 0x216   : > { %1193 = vmatprep.subr.mxu1 %v3305_v25  ;;  %v4433_v25 = vld [vmem:[#allocation47_spill] sm:$0xff] }
 0x217   : > { %1194 = vmatpush2.msra.mxu1 %v3311_v26  ;;  %v4434_v26 = vld [vmem:[#allocation48_spill] sm:$0xff] }
 0x218   : > { %1195 = vmatprep.subr.mxu1 %v3317_v27  ;;  %v4435_v27 = vld [vmem:[#allocation49_spill] sm:$0xff] }
 0x219   : > { %1196 = vmatpush2.msra.mxu1 %v3323_v29  ;;  %v4436_v29 = vld [vmem:[#allocation50_spill] sm:$0xff] }
 0x21a   : > { %1197 = vmatprep.subr.mxu1 %v3329_v34  ;;  %v4437_v34 = vld [vmem:[#allocation51_spill] sm:$0xff] }
 0x21b   : > { %1198 = vmatpush2.msra.mxu1 %v3335_v35  ;;  %v4438_v35 = vld [vmem:[#allocation52_spill] sm:$0xff] }
 0x21c   : > { %1199 = vmatprep.subr.mxu1 %v3341_v37  ;;  %v4439_v37 = vld [vmem:[#allocation53_spill] sm:$0xff] }
 0x21d   : > { %1200 = vmatpush2.msra.mxu1 %v3347_v38  ;;  %v4440_v38 = vld [vmem:[#allocation54_spill] sm:$0xff] }
 0x21e   : > { %1201 = vmatprep.subr.mxu1 %v3353_v41  ;;  %v4441_v41 = vld [vmem:[#allocation55_spill] sm:$0xff] }
 0x21f   : > { %1202 = vmatpush2.msra.mxu1 %v3359_v42  ;;  %v4442_v42 = vld [vmem:[#allocation56_spill] sm:$0xff] }
 0x220   : > { %1203 = vmatprep.subr.mxu1 %v3365_v44  ;;  %v4443_v44 = vld [vmem:[#allocation57_spill] sm:$0xff] }
 0x221   : > { %1204 = vmatpush2.msra.mxu1 %v3371_v45  ;;  %v4444_v45 = vld [vmem:[#allocation58_spill] sm:$0xff] }
 0x222   : > { %1205 = vmatprep.subr.mxu1 %v3377_v47  ;;  %v4445_v47 = vld [vmem:[#allocation59_spill] sm:$0xff] }
 0x223   : > { %1206 = vmatpush2.msra.mxu1 %v3383_v49  ;;  %v4446_v49 = vld [vmem:[#allocation60_spill] sm:$0xff] }
 0x224   : > { %1207 = vmatprep.subr.mxu1 %v4395_v59  ;;  %v4453_v59 = vld [vmem:[#allocation67_spill] sm:$0xff] }
 0x225   : > { %1208 = vmatpush2.msra.mxu1 %v4396_v60  ;;  %v4454_v60 = vld [vmem:[#allocation68_spill] sm:$0xff] }
 0x226   : > { %1209 = vmatprep.subr.mxu1 %v4397_v61  ;;  %v4455_v61 = vld [vmem:[#allocation69_spill] sm:$0xff] }
 0x227   : > { %1210 = vmatpush2.msra.mxu1 %v4398_v62  ;;  %v4456_v62 = vld [vmem:[#allocation70_spill] sm:$0xff] }
 0x228   : > { %1211 = vmatprep.subr.mxu1 %v4399_v63  ;;  %v4457_v63 = vld [vmem:[#allocation71_spill] sm:$0xff] }
 0x229   : > { %1212 = vmatpush2.msra.mxu1 %v4400_v20  ;;  %v4458_v20 = vld [vmem:[#allocation72_spill] sm:$0xff] }
 0x22a   : > { %1213 = vmatprep.subr.mxu1 %v4401_v22  ;;  %v4459_v22 = vld [vmem:[#allocation73_spill] sm:$0xff] }
 0x22b   : > { %1214 = vmatpush2.msra.mxu1 %v4402_v36  ;;  %v4460_v36 = vld [vmem:[#allocation74_spill] sm:$0xff] }
 0x22c   : > { %1215 = vmatprep.subr.mxu1 %v4403_v43  ;;  %v4461_v43 = vld [vmem:[#allocation75_spill] sm:$0xff] }
 0x22d   : > { %1216 = vmatpush2.msra.mxu1 %v4404_v46  ;;  %v4462_v46 = vld [vmem:[#allocation8_spill] sm:$0xff] }
 0x22e   : > { %1217 = vmatprep.subr.mxu1 %v4405_v31  ;;  %v4463_v31 = vld [vmem:[#allocation76_spill] sm:$0xff] }
 0x22f   : > { %1218 = vmatpush2.msra.mxu1 %v4406_v30  ;;  %v4464_v30 = vld [vmem:[#allocation77_spill] sm:$0xff] }
 0x230   : > { %1297 = vmatprep.subr.mxu1 %v4407_v23  ;;  %1220 = vmatmul.mubr.f32.vlgmr.msra.gmra.mxu1 %v3927_v0  ;;  %v4465_v23 = vld [vmem:[#allocation78_spill] sm:$0xff] }
 0x231   : > { %1298 = vmatpush1.msra.mxu1 %v4408_v1  ;;  %1361 = vmatprep.mubr.f32.mxu1 %v2817_v50  ;;  %v4419_v50 = vld [vmem:[#allocation33_spill] sm:$0xff]  ;;  %v4466_v1 = vld [vmem:[#allocation79_spill] sm:$0xff] }
 0x232   : > { %1299 = vmatprep.subr.mxu1 %v4409_v2 }
 0x233   : > { %1300 = vmatpush1.msra.mxu1 %v4410_v3 }
 0x234   : > { %1301 = vmatprep.subr.mxu1 %v4411_v4 }
 0x235   : > { %1302 = vmatpush1.msra.mxu1 %v4412_v5 }
 0x236   : > { %1303 = vmatprep.subr.mxu1 %v4413_v6 }
 0x237   : > { %1304 = vmatpush1.msra.mxu1 %v4414_v7 }
 0x238   : > { %1305 = vmatprep.subr.mxu1 %v4415_v8 }
 0x239   : > { %1306 = vmatpush1.msra.mxu1 %v4416_v9 }
 0x23a   : > { %1307 = vmatprep.subr.mxu1 %v4417_v10 }
 0x23b   : > { %1308 = vmatpush1.msra.mxu1 %v4418_v11 }
 0x23c   : > { %1309 = vmatprep.subr.mxu1 %v4419_v50 }
 0x23d   : > { %1310 = vmatpush1.msra.mxu1 %v4420_v12 }
 0x23e   : > { %1311 = vmatprep.subr.mxu1 %v4421_v13 }
 0x23f   : > { %1312 = vmatpush1.msra.mxu1 %v4422_v33 }
 0x240   : > { %1313 = vmatprep.subr.mxu1 %v4423_v39 }
 0x241   : > { %1314 = vmatpush1.msra.mxu1 %v4424_v28 }
 0x242   : > { %1315 = vmatprep.subr.mxu1 %v4425_v32 }
 0x243   : > { %1316 = vmatpush1.msra.mxu1 %v4426_v15 }
 0x244   : > { %1317 = vmatprep.subr.mxu1 %v4427_v16 }
 0x245   : > { %1318 = vmatpush1.msra.mxu1 %v4428_v17 }
 0x246   : > { %1319 = vmatprep.subr.mxu1 %v4429_v18 }
 0x247   : > { %1320 = vmatpush1.msra.mxu1 %v4430_v19 }
 0x248   : > { %1321 = vmatprep.subr.mxu1 %v4431_v21 }
 0x249   : > { %1322 = vmatpush1.msra.mxu1 %v4432_v24 }
 0x24a   : > { %1323 = vmatprep.subr.mxu1 %v4433_v25 }
 0x24b   : > { %1324 = vmatpush1.msra.mxu1 %v4434_v26 }
 0x24c   : > { %1325 = vmatprep.subr.mxu1 %v4435_v27 }
 0x24d   : > { %1326 = vmatpush1.msra.mxu1 %v4436_v29 }
 0x24e   : > { %1327 = vmatprep.subr.mxu1 %v4437_v34 }
 0x24f   : > { %1328 = vmatpush1.msra.mxu1 %v4438_v35 }
 0x250   : > { %1329 = vmatprep.subr.mxu1 %v4439_v37 }
 0x251   : > { %1330 = vmatpush2.msra.mxu1 %v4440_v38 }
 0x252   : > { %1331 = vmatprep.subr.mxu1 %v4441_v41 }
 0x253   : > { %1332 = vmatpush2.msra.mxu1 %v4442_v42 }
 0x254   : > { %1333 = vmatprep.subr.mxu1 %v4443_v44 }
 0x255   : > { %1334 = vmatpush2.msra.mxu1 %v4444_v45  ;;  %v887_v2 = vpop.f32.mrf.mxu1 }
 0x256   : > { %1335 = vmatprep.subr.mxu1 %v4445_v47 }
 0x257   : > { %1336 = vmatpush2.msra.mxu1 %v4446_v49  ;;  %v889_v3 = vpop.f32.mrf.mxu1 }
 0x258   : > { %1337 = vmatprep.subr.mxu1 %v4447_v52  ;;  %v1043_v4 = vcombine.low %v887_v2, %v889_v3 }
 0x259   : > { %1338 = vmatpush2.msra.mxu1 %v4448_v53 }
 0x25a   : > { %1339 = vmatprep.subr.mxu1 %v4449_v57  ;;  %1051 = vst [vmem:[%s2982_s19 + $0x8] sm:$0x77] %v1043_v4 }
 0x25b   : > { %1340 = vmatpush2.msra.mxu1 %v4450_v40 }
 0x25c   : > { %1341 = vmatprep.subr.mxu1 %v4451_v14 }
 0x25d   : > { %1342 = vmatpush2.msra.mxu1 %v4452_v55 }
 0x25e   : > { %1343 = vmatprep.subr.mxu1 %v4453_v59 }
 0x25f   : > { %1344 = vmatpush2.msra.mxu1 %v4454_v60 }
 0x260   : > { %1345 = vmatprep.subr.mxu1 %v4455_v61 }
 0x261   : > { %1346 = vmatpush2.msra.mxu1 %v4456_v62 }
 0x262   : > { %1347 = vmatprep.subr.mxu1 %v4457_v63 }
 0x263   : > { %1348 = vmatpush2.msra.mxu1 %v4458_v20 }
 0x264   : > { %1349 = vmatprep.subr.mxu1 %v4459_v22 }
 0x265   : > { %1350 = vmatpush2.msra.mxu1 %v4460_v36 }
 0x266   : > { %1351 = vmatprep.subr.mxu1 %v4461_v43 }
 0x267   : > { %1352 = vmatpush2.msra.mxu1 %v4462_v46 }
 0x268   : > { %1353 = vmatprep.subr.mxu1 %v4463_v31 }
 0x269   : > { %1354 = vmatpush2.msra.mxu1 %v4464_v30 }
 0x26a   : > { %1355 = vmatprep.subr.mxu1 %v4465_v23 }
 0x26b   : > { %1356 = vmatpush2.msra.mxu1 %v4466_v1 }
 0x26c   : > { %1357 = vmatprep.subr.mxu1 %v3827_v54 }
 0x26d   : > { %1358 = vmatpush2.msra.mxu1 %v3833_v48 }
 0x26e   : > { %1359 = vmatprep.subr.mxu1 %v3842_v56 }
 0x26f   : > { %1360 = vmatpush2.msra.mxu1 %v3848_v58 }
 0x270   : > { %1362 = vmatmul.mubr.f32.vlgmr.msra.gmra.mxu1 %v3927_v0 }
 0x27e   : > { %v1513_v5 = vpop.xlane.xlu0 %1512 }
 0x27f   : > { %v1514_v6 = vsub.f32 %v3851_v51, %v1513_v5 }
 0x281   : > { %v1515_v7 = vmul.f32 1.442695, %v1514_v6 }
 0x283   : > { %1835 = vpow2.f32 %v1515_v7 }
 0x290   : > { %v1836_v54 = vpop.eup %1835 }
 0x291   : > { %v1517_v48 = vsel %vm1509_vm1, %v1836_v54, 0.0 }
 0x292   : > { %1518 = vadd.xlane.f32.xlu0 %v1517_v48 }
 0x2b0   : > { %v1029_v56 = vpop.f32.mrf.mxu1 }
 0x2b2   : > { %v1031_v8 = vpop.f32.mrf.mxu1 }
 0x2b3   : > { %v1045_v58 = vcombine.low %v1029_v56, %v1031_v8 }
 0x2b5   : > { %1053 = vst [vmem:[%s2982_s19 + $0x18] sm:$0x77] %v1045_v58  ;;  %s1569_s19 = sshll.u32 %s1908_s26, 4  ;;  %s1570_s19 = int_to_ptr.vmem [resolvable:$true] %s1569_s19 }
 0x2b6   : > { %s1843_s29 = scalar_lea.vmem %s1570_s19, 32  ;;  %p1850_p8 = scmp.lt.s32.totalorder %s1570_s19, %s1570_s19 }
 0x2b7   : > { %p1844_p5 = scmp.ne.s32.totalorder %s1570_s19, %s1843_s29  ;;  %p1851_p9 = scmp.lt.s32.totalorder %s1843_s29, %s1843_s29 }
 0x2b9   : > { %p1845_p6 = pnand %p1844_p5, %p1820_p4  ;;  %p1852_p10 = por %p1851_p9, %p1850_p8 }
 0x2bb   : > { %p1846_p7 = pneg %p1845_p6 }
 0x2bd   : > { %p1853_p11 = pnand %p1852_p10, %p1846_p7 }
 0x2f0   : > { %v1221_v0 = vpop.f32.mrf.mxu1 }
 0x2f2   : > { %v1223_v9 = vpop.f32.mrf.mxu1 }
 0x2f3   : > { %v1377_v10 = vcombine.low %v1221_v0, %v1223_v9 }
 0x2f5   : > { %1385 = vst [vmem:[%s3250_s15 + $0x8] sm:$0x77] %v1377_v10 }
 0x31b   : > { %v1519_v11 = vpop.xlane.xlu0 %1518 }
 0x31c   : > { %1837 = vrcp.f32 %v1519_v11 }
 0x329   : > { %v1838_v50 = vpop.eup %1837 }
 0x32a   : > { %v1521_v51 = vmul.f32 %v1838_v50, %v1836_v54 }
 0x32c   : > { %v1525_v12 = vmul.f32 %v1521_v51, %v1514_v6  ;;  %1522 = vst.msk [vmem:[#allocation4] sm:$0x3] %vm1509_vm1, %v1521_v51 }
 0x32e   : > { %v1526_v13 = vsel %vm1509_vm1, %v1525_v12, 0.0 }
 0x32f   : > { %1527 = vadd.xlane.f32.xlu1 %v1526_v13 }
 0x330   : > { %v1363_v33 = vpop.f32.mrf.mxu1 }
 0x332   : > { %v1365_v39 = vpop.f32.mrf.mxu1 }
 0x333   : > { %v1379_v28 = vcombine.low %v1363_v33, %v1365_v39 }
 0x335   : > { %1387 = vst [vmem:[%s3250_s15 + $0x18] sm:$0x77] %v1379_v28 }
 0x336   : > { %1856 = shalt.err (!%p1853_p11)
}
 0x337   : > { %1813 = dma.vmem_to_hbm [thread:$0]  (%p1820_p4), %s1570_s19, 32, %s4042_s10, [#allocation3]  }
 0x338   : > { %s1867_s16 = scalar_lea.vmem %s1581_s27, 32  ;;  %p1874_p1 = scmp.lt.s32.totalorder %s1581_s27, %s1581_s27 }
 0x339   : > { %p1868_p12 = scmp.ne.s32.totalorder %s1581_s27, %s1867_s16  ;;  %p1875_p2 = scmp.lt.s32.totalorder %s1867_s16, %s1867_s16 }
 0x33b   : > { %p1869_p13 = pnand %p1868_p12, %p1820_p4  ;;  %p1876_p3 = por %p1875_p2, %p1874_p1 }
 0x33d   : > { %p1870_p0 = pneg %p1869_p13 }
 0x33f   : > { %p1877_p5 = pnand %p1876_p3, %p1870_p0 }
 0x341   : > { %1880 = shalt.err (!%p1877_p5)
}
 0x342   : > { %1815 = dma.vmem_to_hbm [thread:$0]  (%p1820_p4), %s1581_s27, 32, %s4043_s11, [#allocation5]   ;;  %1839 = vlog2.f32 %v1519_v11  ;;  %vm1530_vm2 = vcmask 1024  }
 0x34f   : > { %v1840_v32 = vpop.eup %1839 }
 0x350   : > { %v1524_v15 = vmul.f32 0.6931472, %v1840_v32 }
 0x3b8   : > { %v1528_v16 = vpop.xlane.xlu1 %1527 }
 0x3b9   : > { %v1529_v17 = vsub.f32 %v1524_v15, %v1528_v16 }
 0x3bb   : > { %1531 = vst.msk [vmem:[%s4044_s12] sm:$0x3] %vm1530_vm2, %v1529_v17 }
 0x3bc   : > { %1896 = dma.done.wait (%p1820_p4), [#allocation3], 32  }
 0x3bd   : > { %1898 = vsyncadd (%p1820_p4), [#allocation3], 4294967264 }
 0x3be   : > { %1900 = dma.done.wait (%p1820_p4), [#allocation5], 32  }
 0x3bf   : > { %1902 = vsyncadd (%p1820_p4), [#allocation5], 4294967264 }
 0x3c0 PF: > { %s25_s21 = sadd.s32 1, %s1905_s21  }
 0x3c1   : > { %p22_p6 = scmp.ge.s32.totalorder %s25_s21, 4  }
 0x3c3   :  { %24 = sbr.rel (!%p22_p6) target bundleno = 2 (0x2), region = 138 }
 0x3c8   :  { %1633 = vsyncpa [#allocation3], 1 }
 0x3c9   :  { %1635 = vsyncpa [#allocation3 + $0x1], 1 }
 0x3ca   :  { %1636 = vsyncpa [#allocation5], 1 }

</bundles_post_ra>
